<compile_context>
chip_gen: v7x
topology: tpu7x:2x2x1
jax: 0.10.0
libtpu: 0.0.40
codegen_flags: <defaults>
</compile_context>

<pallas_src>
import functools

import jax
import jax.numpy as jnp
from jax.experimental import pallas as pl
from jax.experimental.pallas import tpu as pltpu


# ---------------------------------------------------------------------------
# Fused kernel: num_layers LSTM layers + FC, everything VMEM-resident.
# ---------------------------------------------------------------------------

def _make_lstm_fc_kernel(num_layers, seq_len, b_pad, hidden):
    """Builds the fused kernel body.

    Kernel refs (positional):
      inputs : x_flat (T*B_pad, Din) bf16,
               then per layer l: wih_t_l (Din_l, 4H) bf16, b_l (1, 4H) f32,
                                 whh_t_l (H, 4H) bf16,
               then fc_w_t (H, C_pad) bf16, fc_b (1, C_pad) f32
      outputs: out (num_layers*B_pad, C_pad) f32  (lane-dense: C_pad % 128 == 0)
      scratch: gx_scr   (T*B_pad, 4H) f32   -- hoisted input-projection gates
               hseq_scr (T*B_pad, H)  f32   -- hidden sequence (input to next layer)
               hfin_scr (num_layers*B_pad, H) f32 -- final hidden state per layer
    """
    H = hidden
    GW = 4 * H
    n_in = 1 + 3 * num_layers + 2

    def kernel(*refs):
        x_ref = refs[0]
        layer_refs = [(refs[1 + 3 * l], refs[2 + 3 * l], refs[3 + 3 * l])
                      for l in range(num_layers)]
        fcw_ref = refs[1 + 3 * num_layers]
        fcb_ref = refs[2 + 3 * num_layers]
        out_ref = refs[n_in]
        gx_scr, hseq_scr, hfin_scr = refs[n_in + 1:n_in + 4]

        for l in range(num_layers):
            wih_ref, b_ref, whh_ref = layer_refs[l]

            # ---- hoisted input projection: one big-M bf16 MXU matmul / layer ----
            if l == 0:
                x_in = x_ref[...]                                   # bf16 (T*Bp, Din)
            else:
                x_in = hseq_scr[...].astype(jnp.bfloat16)           # (T*Bp, H)
            gx_scr[...] = (
                jnp.dot(x_in, wih_ref[...], preferred_element_type=jnp.float32)
                + b_ref[...]
            )                                                        # f32 (T*Bp, 4H)

            whh = whh_ref[...]                                       # bf16 (H, 4H)
            store_seq = (l + 1 < num_layers)

            # ---- recurrence: only h @ W_hh + f32 gate math per step ----
            # TODO(synk): for H >= 128, pin W_hh with pltpu.matmul_push_rhs and use
            # matmul_acc_lhs/matmul_pop per step instead of re-staging the RHS.
            def one_step(off, h, c):
                gates = gx_scr[pl.ds(off, b_pad), :] + jnp.dot(
                    h.astype(jnp.bfloat16), whh,
                    preferred_element_type=jnp.float32)              # f32 (Bp, 4H)
                if GW <= 128:
                    # 4H fits one vreg: full-width EUP is free, then slice gates.
                    sig = jax.nn.sigmoid(gates)
                    tnh = jnp.tanh(gates)
                    i_g = sig[:, 0 * H:1 * H]
                    f_g = sig[:, 1 * H:2 * H]
                    g_g = tnh[:, 2 * H:3 * H]
                    o_g = sig[:, 3 * H:4 * H]
                else:
                    # wide gates: one transcendental per gate block (no 2x EUP work)
                    if_g = jax.nn.sigmoid(gates[:, 0:2 * H])
                    g_g = jnp.tanh(gates[:, 2 * H:3 * H])
                    o_g = jax.nn.sigmoid(gates[:, 3 * H:4 * H])
                    i_g = if_g[:, 0:H]
                    f_g = if_g[:, H:2 * H]
                c_new = f_g * c + i_g * g_g
                h_new = o_g * jnp.tanh(c_new)
                return h_new, c_new

            h = jnp.zeros((b_pad, H), jnp.float32)
            c = jnp.zeros((b_pad, H), jnp.float32)

            if seq_len <= 16:
                # short sequence: static unroll, sublane-aligned static offsets
                for t in range(seq_len):
                    off = t * b_pad
                    h, c = one_step(off, h, c)
                    if store_seq:
                        hseq_scr[pl.ds(off, b_pad), :] = h
            else:
                # long sequence: fori_loop bounds vreg live ranges; modest unroll
                def body(t, carry):
                    hh, cc = carry
                    off = pl.multiple_of(t * b_pad, b_pad)
                    hh, cc = one_step(off, hh, cc)
                    if store_seq:
                        hseq_scr[pl.ds(off, b_pad), :] = hh
                    return (hh, cc)
                h, c = jax.lax.fori_loop(0, seq_len, body, (h, c), unroll=4)

            hfin_scr[pl.ds(l * b_pad, b_pad), :] = h

        # ---- fused FC on stacked final hidden states (lane-dense C_pad output) ----
        out_ref[...] = (
            jnp.dot(hfin_scr[...].astype(jnp.bfloat16), fcw_ref[...],
                    preferred_element_type=jnp.float32)
            + fcb_ref[...]
        ).astype(out_ref.dtype)

    return kernel


# ---------------------------------------------------------------------------
# Wrapper
# ---------------------------------------------------------------------------

def prepare_kernel_params(params, num_layers):
    """One-time prep (outside the hot path): bf16-cast MXU operands and pad the
    FC weights/bias to a 128-lane-multiple output width."""
    H = params["whh_t_0"].shape[0]
    C = params["w_fc_t"].shape[1]
    c_pad = ((C + 127) // 128) * 128
    kp = {}
    for l in range(num_layers):
        kp[f"wih_t_{l}"] = params[f"wih_t_{l}"].astype(jnp.bfloat16)
        kp[f"whh_t_{l}"] = params[f"whh_t_{l}"].astype(jnp.bfloat16)
        kp[f"b_{l}"] = params[f"b_{l}"].astype(jnp.float32)
    w_fc = jnp.zeros((H, c_pad), jnp.bfloat16)
    w_fc = w_fc.at[:, :C].set(params["w_fc_t"].astype(jnp.bfloat16))
    b_fc = jnp.zeros((1, c_pad), jnp.float32)
    b_fc = b_fc.at[:, :C].set(params["b_fc"].astype(jnp.float32))
    kp["w_fc_t"] = w_fc
    kp["b_fc"] = b_fc
    return kp


@functools.partial(jax.jit, static_argnames=("num_layers", "num_classes"))
def lstm_forward(x, kparams, num_layers, num_classes):
    """Matches the PyTorch module: returns fc(h_out.view(-1, H)).

    x: (B, T, input_size), batch_first.  output: (num_layers * B, num_classes)
    """
    B, T, Din = x.shape
    H = kparams["whh_t_0"].shape[0]
    c_pad = kparams["w_fc_t"].shape[1]
    b_pad = max(8, ((B + 7) // 8) * 8)               # sublane-aligned batch

    # x-side layout prep: transpose + pad + reshape + bf16 cast fuse into a single
    # small copy/convert under jit (weight prep is done once in prepare_kernel_params).
    x_seq = jnp.transpose(x, (1, 0, 2))              # time-major (T, B, Din)
    if b_pad != B:
        x_seq = jnp.pad(x_seq, ((0, 0), (0, b_pad - B), (0, 0)))
    x_flat = x_seq.reshape(T * b_pad, Din).astype(jnp.bfloat16)

    inputs = [x_flat]
    for l in range(num_layers):
        inputs += [kparams[f"wih_t_{l}"], kparams[f"b_{l}"], kparams[f"whh_t_{l}"]]
    inputs += [kparams["w_fc_t"], kparams["b_fc"]]

    # VMEM footprint (gridless => single-buffered, everything resident) & cost hint.
    in_bytes = sum(a.size * a.dtype.itemsize for a in inputs)
    out_bytes = num_layers * b_pad * c_pad * 4
    scr_bytes = (T * b_pad * 4 * H + T * b_pad * H + num_layers * b_pad * H) * 4
    vmem_bytes = in_bytes + out_bytes + scr_bytes
    vmem_limit = int(min(max(2 * vmem_bytes + (1 << 20), 16 << 20), 64 << 20))

    din_per_layer = [Din] + [H] * (num_layers - 1)
    proj_flops = sum(2 * T * b_pad * d * 4 * H for d in din_per_layer)
    rec_flops = num_layers * T * 2 * b_pad * H * 4 * H
    fc_flops = 2 * num_layers * b_pad * H * c_pad
    cost = pl.CostEstimate(
        flops=proj_flops + rec_flops + fc_flops,
        transcendentals=num_layers * T * b_pad * 5 * H,
        bytes_accessed=in_bytes + out_bytes,
    )

    out_full = pl.pallas_call(
        _make_lstm_fc_kernel(num_layers, T, b_pad, H),
        out_shape=jax.ShapeDtypeStruct((num_layers * b_pad, c_pad), jnp.float32),
        scratch_shapes=[
            pltpu.VMEM((T * b_pad, 4 * H), jnp.float32),          # gx_scr
            pltpu.VMEM((T * b_pad, H), jnp.float32),              # hseq_scr
            pltpu.VMEM((num_layers * b_pad, H), jnp.float32),     # hfin_scr
        ],
        compiler_params=pltpu.CompilerParams(vmem_limit_bytes=vmem_limit),
        cost_estimate=cost,
    )(*inputs)

    # drop padded batch rows / padded class lanes; PyTorch h_out.view(-1, H)
    # ordering is layer-major then batch.
    out = out_full.reshape(num_layers, b_pad, c_pad)[:, :B, :num_classes]
    return out.reshape(num_layers * B, num_classes)


def init_params(key, num_classes, input_size, hidden_size, num_layers):
    """Deterministic PyTorch-style uniform(-1/sqrt(H), 1/sqrt(H)) init (f32)."""
    params = {}
    bound = 1.0 / jnp.sqrt(jnp.float32(hidden_size))
    for l in range(num_layers):
        d_in = input_size if l == 0 else hidden_size
        key, k1, k2, k3, k4 = jax.random.split(key, 5)
        w_ih = jax.random.uniform(k1, (4 * hidden_size, d_in), jnp.float32, -bound, bound)
        w_hh = jax.random.uniform(k2, (4 * hidden_size, hidden_size), jnp.float32, -bound, bound)
        b_ih = jax.random.uniform(k3, (4 * hidden_size,), jnp.float32, -bound, bound)
        b_hh = jax.random.uniform(k4, (4 * hidden_size,), jnp.float32, -bound, bound)
        params[f"wih_t_{l}"] = w_ih.T                          # (d_in, 4H)
        params[f"whh_t_{l}"] = w_hh.T                          # (H, 4H)
        params[f"b_{l}"] = (b_ih + b_hh).reshape(1, 4 * hidden_size)
    key, k1, k2 = jax.random.split(key, 3)
    w_fc = jax.random.uniform(k1, (num_classes, hidden_size), jnp.float32, -bound, bound)
    b_fc = jax.random.uniform(k2, (num_classes,), jnp.float32, -bound, bound)
    params["w_fc_t"] = w_fc.T                                  # (H, C)
    params["b_fc"] = b_fc.reshape(1, num_classes)
    return params


# Pure-JAX reference.  matmul_dtype=bf16 mirrors the kernel's MXU operand casts
# (f32 accumulation everywhere), matmul_dtype=f32 is the PyTorch-style reference.
def _reference_forward(x, params, num_layers, hidden_size, matmul_dtype=jnp.float32):
    B = x.shape[0]
    H = hidden_size
    x_seq = jnp.transpose(x, (1, 0, 2)).astype(jnp.float32)

    def mm(a, b):
        return jnp.dot(a.astype(matmul_dtype), b.astype(matmul_dtype),
                       preferred_element_type=jnp.float32)

    h_finals = []
    inp = x_seq
    for l in range(num_layers):
        wih_t, whh_t, b = params[f"wih_t_{l}"], params[f"whh_t_{l}"], params[f"b_{l}"]

        def step(carry, x_t):
            h, c = carry
            gates = mm(x_t, wih_t) + mm(h, whh_t) + b
            i = jax.nn.sigmoid(gates[:, 0 * H:1 * H])
            f = jax.nn.sigmoid(gates[:, 1 * H:2 * H])
            g = jnp.tanh(gates[:, 2 * H:3 * H])
            o = jax.nn.sigmoid(gates[:, 3 * H:4 * H])
            c = f * c + i * g
            h = o * jnp.tanh(c)
            return (h, c), h

        init = (jnp.zeros((B, H), jnp.float32), jnp.zeros((B, H), jnp.float32))
        (h_T, _), hseq = jax.lax.scan(step, init, inp)
        h_finals.append(h_T)
        inp = hseq
    h_out = jnp.concatenate(h_finals, axis=0)
    return mm(h_out, params["w_fc_t"]) + params["b_fc"]


if __name__ == "__main__":
    batch, seq_len = 2, 8
    input_size, hidden_size = 16, 32
    num_layers, num_classes = 2, 8

    key = jax.random.PRNGKey(0)
    key, xk = jax.random.split(key)
    x = jax.random.normal(xk, (batch, seq_len, input_size), jnp.float32)

    params = init_params(key, num_classes, input_size, hidden_size, num_layers)
    kparams = prepare_kernel_params(params, num_layers)   # one-time weight prep

    out = lstm_forward(x, kparams, num_layers, num_classes)
    out = jax.block_until_ready(out)
    assert out.shape == (num_layers * batch, num_classes), out.shape

    # Tight check vs a reference that mirrors the kernel's bf16 MXU operands.
    ref_bf16 = _reference_forward(x, params, num_layers, hidden_size, jnp.bfloat16)
    assert jnp.allclose(out, ref_bf16, atol=1e-3, rtol=1e-3), "mismatch vs bf16-matched ref"

    # Loose check vs the full-f32 (PyTorch-semantics) reference; error bounded by
    # the bf16 operand cast (f32 accumulation / f32 gate math keep it small).
    ref_f32 = _reference_forward(x, params, num_layers, hidden_size, jnp.float32)
    assert jnp.allclose(out, ref_f32, atol=5e-2, rtol=5e-2), "mismatch vs f32 reference"

    print("KERNEL_OK")
</pallas_src>

<mosaic_0001>
module attributes {stable_mosaic.version = 11 : i64} {
  func.func @kernel(%arg0: memref<64x16xbf16, #tpu.memory_space<vmem>>, %arg1: memref<16x128xbf16, #tpu.memory_space<vmem>>, %arg2: memref<1x128xf32, #tpu.memory_space<vmem>>, %arg3: memref<32x128xbf16, #tpu.memory_space<vmem>>, %arg4: memref<32x128xbf16, #tpu.memory_space<vmem>>, %arg5: memref<1x128xf32, #tpu.memory_space<vmem>>, %arg6: memref<32x128xbf16, #tpu.memory_space<vmem>>, %arg7: memref<32x128xbf16, #tpu.memory_space<vmem>>, %arg8: memref<1x128xf32, #tpu.memory_space<vmem>>, %arg9: memref<16x128xf32, #tpu.memory_space<vmem>>, %arg10: memref<64x128xf32, #tpu.memory_space<vmem>>, %arg11: memref<64x32xf32, #tpu.memory_space<vmem>>, %arg12: memref<16x32xf32, #tpu.memory_space<vmem>>) attributes {dimension_semantics = [], scalar_prefetch = 0 : i64, scratch_operands = 3 : i64, tpu.core_type = #tpu.core_type<tc>} {
    %c0 = arith.constant 0 : index
    %c0_0 = arith.constant 0 : index
    %0 = vector.load %arg0[%c0, %c0_0] : memref<64x16xbf16, #tpu.memory_space<vmem>>, vector<64x16xbf16>
    %c0_1 = arith.constant 0 : index
    %c0_2 = arith.constant 0 : index
    %1 = vector.load %arg1[%c0_1, %c0_2] : memref<16x128xbf16, #tpu.memory_space<vmem>>, vector<16x128xbf16>
    %cst = arith.constant dense<0.000000e+00> : vector<64x128xf32>
    %2 = tpu.matmul %0, %1, %cst {dimension_numbers = #tpu.dot_dimension_numbers<[1], [0], [0], [1], [0, 0, 1, 1], [], []>} : vector<64x16xbf16>, vector<16x128xbf16>, vector<64x128xf32> -> vector<64x128xf32>
    %c0_3 = arith.constant 0 : index
    %c0_4 = arith.constant 0 : index
    %3 = vector.load %arg2[%c0_3, %c0_4] : memref<1x128xf32, #tpu.memory_space<vmem>>, vector<1x128xf32>
    %4 = vector.broadcast %3 : vector<1x128xf32> to vector<64x128xf32>
    %5 = arith.addf %2, %4 : vector<64x128xf32>
    %c0_5 = arith.constant 0 : index
    %c0_6 = arith.constant 0 : index
    %6 = vector.load %arg10[%c0_5, %c0_6] : memref<64x128xf32, #tpu.memory_space<vmem>>, vector<64x128xf32>
    tpu.vector_store %arg10[%c0_5, %c0_6], %5 {strides = array<i32>} : memref<64x128xf32, #tpu.memory_space<vmem>>, vector<64x128xf32>,
    %c0_7 = arith.constant 0 : index
    %c0_8 = arith.constant 0 : index
    %7 = vector.load %arg3[%c0_7, %c0_8] : memref<32x128xbf16, #tpu.memory_space<vmem>>, vector<32x128xbf16>
    %cst_9 = arith.constant 0.000000e+00 : f32
    %8 = vector.broadcast %cst_9 : f32 to vector<8x32xf32>
    %cst_10 = arith.constant 0.000000e+00 : f32
    %9 = vector.broadcast %cst_10 : f32 to vector<8x32xf32>
    %c0_11 = arith.constant 0 : index
    %c0_12 = arith.constant 0 : index
    %10 = vector.load %arg10[%c0_11, %c0_12] : memref<64x128xf32, #tpu.memory_space<vmem>>, vector<8x128xf32>
    %11 = arith.truncf %8 : vector<8x32xf32> to vector<8x32xbf16>
    %cst_13 = arith.constant dense<0.000000e+00> : vector<8x128xf32>
    %12 = tpu.matmul %11, %7, %cst_13 {dimension_numbers = #tpu.dot_dimension_numbers<[1], [0], [0], [1], [0, 0, 1, 1], [], []>} : vector<8x32xbf16>, vector<32x128xbf16>, vector<8x128xf32> -> vector<8x128xf32>
    %13 = arith.addf %10, %12 : vector<8x128xf32>
    %14 = arith.negf %13 : vector<8x128xf32>
    %15 = math.exp %14 : vector<8x128xf32>
    %cst_14 = arith.constant 1.000000e+00 : f32
    %16 = vector.broadcast %cst_14 : f32 to vector<8x128xf32>
    %17 = arith.addf %16, %15 : vector<8x128xf32>
    %18 = arith.divf %16, %17 : vector<8x128xf32>
    %19 = math.tanh %13 : vector<8x128xf32>
    %20 = vector.extract_strided_slice %18 {offsets = [0, 0], sizes = [8, 32], strides = [1, 1]} : vector<8x128xf32> to vector<8x32xf32>
    %21 = vector.extract_strided_slice %18 {offsets = [0, 32], sizes = [8, 32], strides = [1, 1]} : vector<8x128xf32> to vector<8x32xf32>
    %22 = vector.extract_strided_slice %19 {offsets = [0, 64], sizes = [8, 32], strides = [1, 1]} : vector<8x128xf32> to vector<8x32xf32>
    %23 = vector.extract_strided_slice %18 {offsets = [0, 96], sizes = [8, 32], strides = [1, 1]} : vector<8x128xf32> to vector<8x32xf32>
    %24 = arith.mulf %21, %9 : vector<8x32xf32>
    %25 = arith.mulf %20, %22 : vector<8x32xf32>
    %26 = arith.addf %24, %25 : vector<8x32xf32>
    %27 = math.tanh %26 : vector<8x32xf32>
    %28 = arith.mulf %23, %27 : vector<8x32xf32>
    %c0_15 = arith.constant 0 : index
    %c0_16 = arith.constant 0 : index
    %29 = vector.load %arg11[%c0_15, %c0_16] : memref<64x32xf32, #tpu.memory_space<vmem>>, vector<8x32xf32>
    tpu.vector_store %arg11[%c0_15, %c0_16], %28 {strides = array<i32>} : memref<64x32xf32, #tpu.memory_space<vmem>>, vector<8x32xf32>,
    %c8 = arith.constant 8 : index
    %c0_17 = arith.constant 0 : index
    %30 = vector.load %arg10[%c8, %c0_17] : memref<64x128xf32, #tpu.memory_space<vmem>>, vector<8x128xf32>
    %31 = arith.truncf %28 : vector<8x32xf32> to vector<8x32xbf16>
    %cst_18 = arith.constant dense<0.000000e+00> : vector<8x128xf32>
    %32 = tpu.matmul %31, %7, %cst_18 {dimension_numbers = #tpu.dot_dimension_numbers<[1], [0], [0], [1], [0, 0, 1, 1], [], []>} : vector<8x32xbf16>, vector<32x128xbf16>, vector<8x128xf32> -> vector<8x128xf32>
    %33 = arith.addf %30, %32 : vector<8x128xf32>
    %34 = arith.negf %33 : vector<8x128xf32>
    %35 = math.exp %34 : vector<8x128xf32>
    %cst_19 = arith.constant 1.000000e+00 : f32
    %36 = vector.broadcast %cst_19 : f32 to vector<8x128xf32>
    %37 = arith.addf %36, %35 : vector<8x128xf32>
    %38 = arith.divf %36, %37 : vector<8x128xf32>
    %39 = math.tanh %33 : vector<8x128xf32>
    %40 = vector.extract_strided_slice %38 {offsets = [0, 0], sizes = [8, 32], strides = [1, 1]} : vector<8x128xf32> to vector<8x32xf32>
    %41 = vector.extract_strided_slice %38 {offsets = [0, 32], sizes = [8, 32], strides = [1, 1]} : vector<8x128xf32> to vector<8x32xf32>
    %42 = vector.extract_strided_slice %39 {offsets = [0, 64], sizes = [8, 32], strides = [1, 1]} : vector<8x128xf32> to vector<8x32xf32>
    %43 = vector.extract_strided_slice %38 {offsets = [0, 96], sizes = [8, 32], strides = [1, 1]} : vector<8x128xf32> to vector<8x32xf32>
    %44 = arith.mulf %41, %26 : vector<8x32xf32>
    %45 = arith.mulf %40, %42 : vector<8x32xf32>
    %46 = arith.addf %44, %45 : vector<8x32xf32>
    %47 = math.tanh %46 : vector<8x32xf32>
    %48 = arith.mulf %43, %47 : vector<8x32xf32>
    %c8_20 = arith.constant 8 : index
    %c0_21 = arith.constant 0 : index
    %49 = vector.load %arg11[%c8_20, %c0_21] : memref<64x32xf32, #tpu.memory_space<vmem>>, vector<8x32xf32>
    tpu.vector_store %arg11[%c8_20, %c0_21], %48 {strides = array<i32>} : memref<64x32xf32, #tpu.memory_space<vmem>>, vector<8x32xf32>,
    %c16 = arith.constant 16 : index
    %c0_22 = arith.constant 0 : index
    %50 = vector.load %arg10[%c16, %c0_22] : memref<64x128xf32, #tpu.memory_space<vmem>>, vector<8x128xf32>
    %51 = arith.truncf %48 : vector<8x32xf32> to vector<8x32xbf16>
    %cst_23 = arith.constant dense<0.000000e+00> : vector<8x128xf32>
    %52 = tpu.matmul %51, %7, %cst_23 {dimension_numbers = #tpu.dot_dimension_numbers<[1], [0], [0], [1], [0, 0, 1, 1], [], []>} : vector<8x32xbf16>, vector<32x128xbf16>, vector<8x128xf32> -> vector<8x128xf32>
    %53 = arith.addf %50, %52 : vector<8x128xf32>
    %54 = arith.negf %53 : vector<8x128xf32>
    %55 = math.exp %54 : vector<8x128xf32>
    %cst_24 = arith.constant 1.000000e+00 : f32
    %56 = vector.broadcast %cst_24 : f32 to vector<8x128xf32>
    %57 = arith.addf %56, %55 : vector<8x128xf32>
    %58 = arith.divf %56, %57 : vector<8x128xf32>
    %59 = math.tanh %53 : vector<8x128xf32>
    %60 = vector.extract_strided_slice %58 {offsets = [0, 0], sizes = [8, 32], strides = [1, 1]} : vector<8x128xf32> to vector<8x32xf32>
    %61 = vector.extract_strided_slice %58 {offsets = [0, 32], sizes = [8, 32], strides = [1, 1]} : vector<8x128xf32> to vector<8x32xf32>
    %62 = vector.extract_strided_slice %59 {offsets = [0, 64], sizes = [8, 32], strides = [1, 1]} : vector<8x128xf32> to vector<8x32xf32>
    %63 = vector.extract_strided_slice %58 {offsets = [0, 96], sizes = [8, 32], strides = [1, 1]} : vector<8x128xf32> to vector<8x32xf32>
    %64 = arith.mulf %61, %46 : vector<8x32xf32>
    %65 = arith.mulf %60, %62 : vector<8x32xf32>
    %66 = arith.addf %64, %65 : vector<8x32xf32>
    %67 = math.tanh %66 : vector<8x32xf32>
    %68 = arith.mulf %63, %67 : vector<8x32xf32>
    %c16_25 = arith.constant 16 : index
    %c0_26 = arith.constant 0 : index
    %69 = vector.load %arg11[%c16_25, %c0_26] : memref<64x32xf32, #tpu.memory_space<vmem>>, vector<8x32xf32>
    tpu.vector_store %arg11[%c16_25, %c0_26], %68 {strides = array<i32>} : memref<64x32xf32, #tpu.memory_space<vmem>>, vector<8x32xf32>,
    %c24 = arith.constant 24 : index
    %c0_27 = arith.constant 0 : index
    %70 = vector.load %arg10[%c24, %c0_27] : memref<64x128xf32, #tpu.memory_space<vmem>>, vector<8x128xf32>
    %71 = arith.truncf %68 : vector<8x32xf32> to vector<8x32xbf16>
    %cst_28 = arith.constant dense<0.000000e+00> : vector<8x128xf32>
    %72 = tpu.matmul %71, %7, %cst_28 {dimension_numbers = #tpu.dot_dimension_numbers<[1], [0], [0], [1], [0, 0, 1, 1], [], []>} : vector<8x32xbf16>, vector<32x128xbf16>, vector<8x128xf32> -> vector<8x128xf32>
    %73 = arith.addf %70, %72 : vector<8x128xf32>
    %74 = arith.negf %73 : vector<8x128xf32>
    %75 = math.exp %74 : vector<8x128xf32>
    %cst_29 = arith.constant 1.000000e+00 : f32
    %76 = vector.broadcast %cst_29 : f32 to vector<8x128xf32>
    %77 = arith.addf %76, %75 : vector<8x128xf32>
    %78 = arith.divf %76, %77 : vector<8x128xf32>
    %79 = math.tanh %73 : vector<8x128xf32>
    %80 = vector.extract_strided_slice %78 {offsets = [0, 0], sizes = [8, 32], strides = [1, 1]} : vector<8x128xf32> to vector<8x32xf32>
    %81 = vector.extract_strided_slice %78 {offsets = [0, 32], sizes = [8, 32], strides = [1, 1]} : vector<8x128xf32> to vector<8x32xf32>
    %82 = vector.extract_strided_slice %79 {offsets = [0, 64], sizes = [8, 32], strides = [1, 1]} : vector<8x128xf32> to vector<8x32xf32>
    %83 = vector.extract_strided_slice %78 {offsets = [0, 96], sizes = [8, 32], strides = [1, 1]} : vector<8x128xf32> to vector<8x32xf32>
    %84 = arith.mulf %81, %66 : vector<8x32xf32>
    %85 = arith.mulf %80, %82 : vector<8x32xf32>
    %86 = arith.addf %84, %85 : vector<8x32xf32>
    %87 = math.tanh %86 : vector<8x32xf32>
    %88 = arith.mulf %83, %87 : vector<8x32xf32>
    %c24_30 = arith.constant 24 : index
    %c0_31 = arith.constant 0 : index
    %89 = vector.load %arg11[%c24_30, %c0_31] : memref<64x32xf32, #tpu.memory_space<vmem>>, vector<8x32xf32>
    tpu.vector_store %arg11[%c24_30, %c0_31], %88 {strides = array<i32>} : memref<64x32xf32, #tpu.memory_space<vmem>>, vector<8x32xf32>,
    %c32 = arith.constant 32 : index
    %c0_32 = arith.constant 0 : index
    %90 = vector.load %arg10[%c32, %c0_32] : memref<64x128xf32, #tpu.memory_space<vmem>>, vector<8x128xf32>
    %91 = arith.truncf %88 : vector<8x32xf32> to vector<8x32xbf16>
    %cst_33 = arith.constant dense<0.000000e+00> : vector<8x128xf32>
    %92 = tpu.matmul %91, %7, %cst_33 {dimension_numbers = #tpu.dot_dimension_numbers<[1], [0], [0], [1], [0, 0, 1, 1], [], []>} : vector<8x32xbf16>, vector<32x128xbf16>, vector<8x128xf32> -> vector<8x128xf32>
    %93 = arith.addf %90, %92 : vector<8x128xf32>
    %94 = arith.negf %93 : vector<8x128xf32>
    %95 = math.exp %94 : vector<8x128xf32>
    %cst_34 = arith.constant 1.000000e+00 : f32
    %96 = vector.broadcast %cst_34 : f32 to vector<8x128xf32>
    %97 = arith.addf %96, %95 : vector<8x128xf32>
    %98 = arith.divf %96, %97 : vector<8x128xf32>
    %99 = math.tanh %93 : vector<8x128xf32>
    %100 = vector.extract_strided_slice %98 {offsets = [0, 0], sizes = [8, 32], strides = [1, 1]} : vector<8x128xf32> to vector<8x32xf32>
    %101 = vector.extract_strided_slice %98 {offsets = [0, 32], sizes = [8, 32], strides = [1, 1]} : vector<8x128xf32> to vector<8x32xf32>
    %102 = vector.extract_strided_slice %99 {offsets = [0, 64], sizes = [8, 32], strides = [1, 1]} : vector<8x128xf32> to vector<8x32xf32>
    %103 = vector.extract_strided_slice %98 {offsets = [0, 96], sizes = [8, 32], strides = [1, 1]} : vector<8x128xf32> to vector<8x32xf32>
    %104 = arith.mulf %101, %86 : vector<8x32xf32>
    %105 = arith.mulf %100, %102 : vector<8x32xf32>
    %106 = arith.addf %104, %105 : vector<8x32xf32>
    %107 = math.tanh %106 : vector<8x32xf32>
    %108 = arith.mulf %103, %107 : vector<8x32xf32>
    %c32_35 = arith.constant 32 : index
    %c0_36 = arith.constant 0 : index
    %109 = vector.load %arg11[%c32_35, %c0_36] : memref<64x32xf32, #tpu.memory_space<vmem>>, vector<8x32xf32>
    tpu.vector_store %arg11[%c32_35, %c0_36], %108 {strides = array<i32>} : memref<64x32xf32, #tpu.memory_space<vmem>>, vector<8x32xf32>,
    %c40 = arith.constant 40 : index
    %c0_37 = arith.constant 0 : index
    %110 = vector.load %arg10[%c40, %c0_37] : memref<64x128xf32, #tpu.memory_space<vmem>>, vector<8x128xf32>
    %111 = arith.truncf %108 : vector<8x32xf32> to vector<8x32xbf16>
    %cst_38 = arith.constant dense<0.000000e+00> : vector<8x128xf32>
    %112 = tpu.matmul %111, %7, %cst_38 {dimension_numbers = #tpu.dot_dimension_numbers<[1], [0], [0], [1], [0, 0, 1, 1], [], []>} : vector<8x32xbf16>, vector<32x128xbf16>, vector<8x128xf32> -> vector<8x128xf32>
    %113 = arith.addf %110, %112 : vector<8x128xf32>
    %114 = arith.negf %113 : vector<8x128xf32>
    %115 = math.exp %114 : vector<8x128xf32>
    %cst_39 = arith.constant 1.000000e+00 : f32
    %116 = vector.broadcast %cst_39 : f32 to vector<8x128xf32>
    %117 = arith.addf %116, %115 : vector<8x128xf32>
    %118 = arith.divf %116, %117 : vector<8x128xf32>
    %119 = math.tanh %113 : vector<8x128xf32>
    %120 = vector.extract_strided_slice %118 {offsets = [0, 0], sizes = [8, 32], strides = [1, 1]} : vector<8x128xf32> to vector<8x32xf32>
    %121 = vector.extract_strided_slice %118 {offsets = [0, 32], sizes = [8, 32], strides = [1, 1]} : vector<8x128xf32> to vector<8x32xf32>
    %122 = vector.extract_strided_slice %119 {offsets = [0, 64], sizes = [8, 32], strides = [1, 1]} : vector<8x128xf32> to vector<8x32xf32>
    %123 = vector.extract_strided_slice %118 {offsets = [0, 96], sizes = [8, 32], strides = [1, 1]} : vector<8x128xf32> to vector<8x32xf32>
    %124 = arith.mulf %121, %106 : vector<8x32xf32>
    %125 = arith.mulf %120, %122 : vector<8x32xf32>
    %126 = arith.addf %124, %125 : vector<8x32xf32>
    %127 = math.tanh %126 : vector<8x32xf32>
    %128 = arith.mulf %123, %127 : vector<8x32xf32>
    %c40_40 = arith.constant 40 : index
    %c0_41 = arith.constant 0 : index
    %129 = vector.load %arg11[%c40_40, %c0_41] : memref<64x32xf32, #tpu.memory_space<vmem>>, vector<8x32xf32>
    tpu.vector_store %arg11[%c40_40, %c0_41], %128 {strides = array<i32>} : memref<64x32xf32, #tpu.memory_space<vmem>>, vector<8x32xf32>,
    %c48 = arith.constant 48 : index
    %c0_42 = arith.constant 0 : index
    %130 = vector.load %arg10[%c48, %c0_42] : memref<64x128xf32, #tpu.memory_space<vmem>>, vector<8x128xf32>
    %131 = arith.truncf %128 : vector<8x32xf32> to vector<8x32xbf16>
    %cst_43 = arith.constant dense<0.000000e+00> : vector<8x128xf32>
    %132 = tpu.matmul %131, %7, %cst_43 {dimension_numbers = #tpu.dot_dimension_numbers<[1], [0], [0], [1], [0, 0, 1, 1], [], []>} : vector<8x32xbf16>, vector<32x128xbf16>, vector<8x128xf32> -> vector<8x128xf32>
    %133 = arith.addf %130, %132 : vector<8x128xf32>
    %134 = arith.negf %133 : vector<8x128xf32>
    %135 = math.exp %134 : vector<8x128xf32>
    %cst_44 = arith.constant 1.000000e+00 : f32
    %136 = vector.broadcast %cst_44 : f32 to vector<8x128xf32>
    %137 = arith.addf %136, %135 : vector<8x128xf32>
    %138 = arith.divf %136, %137 : vector<8x128xf32>
    %139 = math.tanh %133 : vector<8x128xf32>
    %140 = vector.extract_strided_slice %138 {offsets = [0, 0], sizes = [8, 32], strides = [1, 1]} : vector<8x128xf32> to vector<8x32xf32>
    %141 = vector.extract_strided_slice %138 {offsets = [0, 32], sizes = [8, 32], strides = [1, 1]} : vector<8x128xf32> to vector<8x32xf32>
    %142 = vector.extract_strided_slice %139 {offsets = [0, 64], sizes = [8, 32], strides = [1, 1]} : vector<8x128xf32> to vector<8x32xf32>
    %143 = vector.extract_strided_slice %138 {offsets = [0, 96], sizes = [8, 32], strides = [1, 1]} : vector<8x128xf32> to vector<8x32xf32>
    %144 = arith.mulf %141, %126 : vector<8x32xf32>
    %145 = arith.mulf %140, %142 : vector<8x32xf32>
    %146 = arith.addf %144, %145 : vector<8x32xf32>
    %147 = math.tanh %146 : vector<8x32xf32>
    %148 = arith.mulf %143, %147 : vector<8x32xf32>
    %c48_45 = arith.constant 48 : index
    %c0_46 = arith.constant 0 : index
    %149 = vector.load %arg11[%c48_45, %c0_46] : memref<64x32xf32, #tpu.memory_space<vmem>>, vector<8x32xf32>
    tpu.vector_store %arg11[%c48_45, %c0_46], %148 {strides = array<i32>} : memref<64x32xf32, #tpu.memory_space<vmem>>, vector<8x32xf32>,
    %c56 = arith.constant 56 : index
    %c0_47 = arith.constant 0 : index
    %150 = vector.load %arg10[%c56, %c0_47] : memref<64x128xf32, #tpu.memory_space<vmem>>, vector<8x128xf32>
    %151 = arith.truncf %148 : vector<8x32xf32> to vector<8x32xbf16>
    %cst_48 = arith.constant dense<0.000000e+00> : vector<8x128xf32>
    %152 = tpu.matmul %151, %7, %cst_48 {dimension_numbers = #tpu.dot_dimension_numbers<[1], [0], [0], [1], [0, 0, 1, 1], [], []>} : vector<8x32xbf16>, vector<32x128xbf16>, vector<8x128xf32> -> vector<8x128xf32>
    %153 = arith.addf %150, %152 : vector<8x128xf32>
    %154 = arith.negf %153 : vector<8x128xf32>
    %155 = math.exp %154 : vector<8x128xf32>
    %cst_49 = arith.constant 1.000000e+00 : f32
    %156 = vector.broadcast %cst_49 : f32 to vector<8x128xf32>
    %157 = arith.addf %156, %155 : vector<8x128xf32>
    %158 = arith.divf %156, %157 : vector<8x128xf32>
    %159 = math.tanh %153 : vector<8x128xf32>
    %160 = vector.extract_strided_slice %158 {offsets = [0, 0], sizes = [8, 32], strides = [1, 1]} : vector<8x128xf32> to vector<8x32xf32>
    %161 = vector.extract_strided_slice %158 {offsets = [0, 32], sizes = [8, 32], strides = [1, 1]} : vector<8x128xf32> to vector<8x32xf32>
    %162 = vector.extract_strided_slice %159 {offsets = [0, 64], sizes = [8, 32], strides = [1, 1]} : vector<8x128xf32> to vector<8x32xf32>
    %163 = vector.extract_strided_slice %158 {offsets = [0, 96], sizes = [8, 32], strides = [1, 1]} : vector<8x128xf32> to vector<8x32xf32>
    %164 = arith.mulf %161, %146 : vector<8x32xf32>
    %165 = arith.mulf %160, %162 : vector<8x32xf32>
    %166 = arith.addf %164, %165 : vector<8x32xf32>
    %167 = math.tanh %166 : vector<8x32xf32>
    %168 = arith.mulf %163, %167 : vector<8x32xf32>
    %c56_50 = arith.constant 56 : index
    %c0_51 = arith.constant 0 : index
    %169 = vector.load %arg11[%c56_50, %c0_51] : memref<64x32xf32, #tpu.memory_space<vmem>>, vector<8x32xf32>
    tpu.vector_store %arg11[%c56_50, %c0_51], %168 {strides = array<i32>} : memref<64x32xf32, #tpu.memory_space<vmem>>, vector<8x32xf32>,
    %c0_52 = arith.constant 0 : index
    %c0_53 = arith.constant 0 : index
    %170 = vector.load %arg12[%c0_52, %c0_53] : memref<16x32xf32, #tpu.memory_space<vmem>>, vector<8x32xf32>
    tpu.vector_store %arg12[%c0_52, %c0_53], %168 {strides = array<i32>} : memref<16x32xf32, #tpu.memory_space<vmem>>, vector<8x32xf32>,
    %c0_54 = arith.constant 0 : index
    %c0_55 = arith.constant 0 : index
    %171 = vector.load %arg11[%c0_54, %c0_55] : memref<64x32xf32, #tpu.memory_space<vmem>>, vector<64x32xf32>
    %172 = arith.truncf %171 : vector<64x32xf32> to vector<64x32xbf16>
    %c0_56 = arith.constant 0 : index
    %c0_57 = arith.constant 0 : index
    %173 = vector.load %arg4[%c0_56, %c0_57] : memref<32x128xbf16, #tpu.memory_space<vmem>>, vector<32x128xbf16>
    %cst_58 = arith.constant dense<0.000000e+00> : vector<64x128xf32>
    %174 = tpu.matmul %172, %173, %cst_58 {dimension_numbers = #tpu.dot_dimension_numbers<[1], [0], [0], [1], [0, 0, 1, 1], [], []>} : vector<64x32xbf16>, vector<32x128xbf16>, vector<64x128xf32> -> vector<64x128xf32>
    %c0_59 = arith.constant 0 : index
    %c0_60 = arith.constant 0 : index
    %175 = vector.load %arg5[%c0_59, %c0_60] : memref<1x128xf32, #tpu.memory_space<vmem>>, vector<1x128xf32>
    %176 = vector.broadcast %175 : vector<1x128xf32> to vector<64x128xf32>
    %177 = arith.addf %174, %176 : vector<64x128xf32>
    %c0_61 = arith.constant 0 : index
    %c0_62 = arith.constant 0 : index
    %178 = vector.load %arg10[%c0_61, %c0_62] : memref<64x128xf32, #tpu.memory_space<vmem>>, vector<64x128xf32>
    tpu.vector_store %arg10[%c0_61, %c0_62], %177 {strides = array<i32>} : memref<64x128xf32, #tpu.memory_space<vmem>>, vector<64x128xf32>,
    %c0_63 = arith.constant 0 : index
    %c0_64 = arith.constant 0 : index
    %179 = vector.load %arg6[%c0_63, %c0_64] : memref<32x128xbf16, #tpu.memory_space<vmem>>, vector<32x128xbf16>
    %cst_65 = arith.constant 0.000000e+00 : f32
    %180 = vector.broadcast %cst_65 : f32 to vector<8x32xf32>
    %cst_66 = arith.constant 0.000000e+00 : f32
    %181 = vector.broadcast %cst_66 : f32 to vector<8x32xf32>
    %c0_67 = arith.constant 0 : index
    %c0_68 = arith.constant 0 : index
    %182 = vector.load %arg10[%c0_67, %c0_68] : memref<64x128xf32, #tpu.memory_space<vmem>>, vector<8x128xf32>
    %183 = arith.truncf %180 : vector<8x32xf32> to vector<8x32xbf16>
    %cst_69 = arith.constant dense<0.000000e+00> : vector<8x128xf32>
    %184 = tpu.matmul %183, %179, %cst_69 {dimension_numbers = #tpu.dot_dimension_numbers<[1], [0], [0], [1], [0, 0, 1, 1], [], []>} : vector<8x32xbf16>, vector<32x128xbf16>, vector<8x128xf32> -> vector<8x128xf32>
    %185 = arith.addf %182, %184 : vector<8x128xf32>
    %186 = arith.negf %185 : vector<8x128xf32>
    %187 = math.exp %186 : vector<8x128xf32>
    %cst_70 = arith.constant 1.000000e+00 : f32
    %188 = vector.broadcast %cst_70 : f32 to vector<8x128xf32>
    %189 = arith.addf %188, %187 : vector<8x128xf32>
    %190 = arith.divf %188, %189 : vector<8x128xf32>
    %191 = math.tanh %185 : vector<8x128xf32>
    %192 = vector.extract_strided_slice %190 {offsets = [0, 0], sizes = [8, 32], strides = [1, 1]} : vector<8x128xf32> to vector<8x32xf32>
    %193 = vector.extract_strided_slice %190 {offsets = [0, 32], sizes = [8, 32], strides = [1, 1]} : vector<8x128xf32> to vector<8x32xf32>
    %194 = vector.extract_strided_slice %191 {offsets = [0, 64], sizes = [8, 32], strides = [1, 1]} : vector<8x128xf32> to vector<8x32xf32>
    %195 = vector.extract_strided_slice %190 {offsets = [0, 96], sizes = [8, 32], strides = [1, 1]} : vector<8x128xf32> to vector<8x32xf32>
    %196 = arith.mulf %193, %181 : vector<8x32xf32>
    %197 = arith.mulf %192, %194 : vector<8x32xf32>
    %198 = arith.addf %196, %197 : vector<8x32xf32>
    %199 = math.tanh %198 : vector<8x32xf32>
    %200 = arith.mulf %195, %199 : vector<8x32xf32>
    %c8_71 = arith.constant 8 : index
    %c0_72 = arith.constant 0 : index
    %201 = vector.load %arg10[%c8_71, %c0_72] : memref<64x128xf32, #tpu.memory_space<vmem>>, vector<8x128xf32>
    %202 = arith.truncf %200 : vector<8x32xf32> to vector<8x32xbf16>
    %cst_73 = arith.constant dense<0.000000e+00> : vector<8x128xf32>
    %203 = tpu.matmul %202, %179, %cst_73 {dimension_numbers = #tpu.dot_dimension_numbers<[1], [0], [0], [1], [0, 0, 1, 1], [], []>} : vector<8x32xbf16>, vector<32x128xbf16>, vector<8x128xf32> -> vector<8x128xf32>
    %204 = arith.addf %201, %203 : vector<8x128xf32>
    %205 = arith.negf %204 : vector<8x128xf32>
    %206 = math.exp %205 : vector<8x128xf32>
    %cst_74 = arith.constant 1.000000e+00 : f32
    %207 = vector.broadcast %cst_74 : f32 to vector<8x128xf32>
    %208 = arith.addf %207, %206 : vector<8x128xf32>
    %209 = arith.divf %207, %208 : vector<8x128xf32>
    %210 = math.tanh %204 : vector<8x128xf32>
    %211 = vector.extract_strided_slice %209 {offsets = [0, 0], sizes = [8, 32], strides = [1, 1]} : vector<8x128xf32> to vector<8x32xf32>
    %212 = vector.extract_strided_slice %209 {offsets = [0, 32], sizes = [8, 32], strides = [1, 1]} : vector<8x128xf32> to vector<8x32xf32>
    %213 = vector.extract_strided_slice %210 {offsets = [0, 64], sizes = [8, 32], strides = [1, 1]} : vector<8x128xf32> to vector<8x32xf32>
    %214 = vector.extract_strided_slice %209 {offsets = [0, 96], sizes = [8, 32], strides = [1, 1]} : vector<8x128xf32> to vector<8x32xf32>
    %215 = arith.mulf %212, %198 : vector<8x32xf32>
    %216 = arith.mulf %211, %213 : vector<8x32xf32>
    %217 = arith.addf %215, %216 : vector<8x32xf32>
    %218 = math.tanh %217 : vector<8x32xf32>
    %219 = arith.mulf %214, %218 : vector<8x32xf32>
    %c16_75 = arith.constant 16 : index
    %c0_76 = arith.constant 0 : index
    %220 = vector.load %arg10[%c16_75, %c0_76] : memref<64x128xf32, #tpu.memory_space<vmem>>, vector<8x128xf32>
    %221 = arith.truncf %219 : vector<8x32xf32> to vector<8x32xbf16>
    %cst_77 = arith.constant dense<0.000000e+00> : vector<8x128xf32>
    %222 = tpu.matmul %221, %179, %cst_77 {dimension_numbers = #tpu.dot_dimension_numbers<[1], [0], [0], [1], [0, 0, 1, 1], [], []>} : vector<8x32xbf16>, vector<32x128xbf16>, vector<8x128xf32> -> vector<8x128xf32>
    %223 = arith.addf %220, %222 : vector<8x128xf32>
    %224 = arith.negf %223 : vector<8x128xf32>
    %225 = math.exp %224 : vector<8x128xf32>
    %cst_78 = arith.constant 1.000000e+00 : f32
    %226 = vector.broadcast %cst_78 : f32 to vector<8x128xf32>
    %227 = arith.addf %226, %225 : vector<8x128xf32>
    %228 = arith.divf %226, %227 : vector<8x128xf32>
    %229 = math.tanh %223 : vector<8x128xf32>
    %230 = vector.extract_strided_slice %228 {offsets = [0, 0], sizes = [8, 32], strides = [1, 1]} : vector<8x128xf32> to vector<8x32xf32>
    %231 = vector.extract_strided_slice %228 {offsets = [0, 32], sizes = [8, 32], strides = [1, 1]} : vector<8x128xf32> to vector<8x32xf32>
    %232 = vector.extract_strided_slice %229 {offsets = [0, 64], sizes = [8, 32], strides = [1, 1]} : vector<8x128xf32> to vector<8x32xf32>
    %233 = vector.extract_strided_slice %228 {offsets = [0, 96], sizes = [8, 32], strides = [1, 1]} : vector<8x128xf32> to vector<8x32xf32>
    %234 = arith.mulf %231, %217 : vector<8x32xf32>
    %235 = arith.mulf %230, %232 : vector<8x32xf32>
    %236 = arith.addf %234, %235 : vector<8x32xf32>
    %237 = math.tanh %236 : vector<8x32xf32>
    %238 = arith.mulf %233, %237 : vector<8x32xf32>
    %c24_79 = arith.constant 24 : index
    %c0_80 = arith.constant 0 : index
    %239 = vector.load %arg10[%c24_79, %c0_80] : memref<64x128xf32, #tpu.memory_space<vmem>>, vector<8x128xf32>
    %240 = arith.truncf %238 : vector<8x32xf32> to vector<8x32xbf16>
    %cst_81 = arith.constant dense<0.000000e+00> : vector<8x128xf32>
    %241 = tpu.matmul %240, %179, %cst_81 {dimension_numbers = #tpu.dot_dimension_numbers<[1], [0], [0], [1], [0, 0, 1, 1], [], []>} : vector<8x32xbf16>, vector<32x128xbf16>, vector<8x128xf32> -> vector<8x128xf32>
    %242 = arith.addf %239, %241 : vector<8x128xf32>
    %243 = arith.negf %242 : vector<8x128xf32>
    %244 = math.exp %243 : vector<8x128xf32>
    %cst_82 = arith.constant 1.000000e+00 : f32
    %245 = vector.broadcast %cst_82 : f32 to vector<8x128xf32>
    %246 = arith.addf %245, %244 : vector<8x128xf32>
    %247 = arith.divf %245, %246 : vector<8x128xf32>
    %248 = math.tanh %242 : vector<8x128xf32>
    %249 = vector.extract_strided_slice %247 {offsets = [0, 0], sizes = [8, 32], strides = [1, 1]} : vector<8x128xf32> to vector<8x32xf32>
    %250 = vector.extract_strided_slice %247 {offsets = [0, 32], sizes = [8, 32], strides = [1, 1]} : vector<8x128xf32> to vector<8x32xf32>
    %251 = vector.extract_strided_slice %248 {offsets = [0, 64], sizes = [8, 32], strides = [1, 1]} : vector<8x128xf32> to vector<8x32xf32>
    %252 = vector.extract_strided_slice %247 {offsets = [0, 96], sizes = [8, 32], strides = [1, 1]} : vector<8x128xf32> to vector<8x32xf32>
    %253 = arith.mulf %250, %236 : vector<8x32xf32>
    %254 = arith.mulf %249, %251 : vector<8x32xf32>
    %255 = arith.addf %253, %254 : vector<8x32xf32>
    %256 = math.tanh %255 : vector<8x32xf32>
    %257 = arith.mulf %252, %256 : vector<8x32xf32>
    %c32_83 = arith.constant 32 : index
    %c0_84 = arith.constant 0 : index
    %258 = vector.load %arg10[%c32_83, %c0_84] : memref<64x128xf32, #tpu.memory_space<vmem>>, vector<8x128xf32>
    %259 = arith.truncf %257 : vector<8x32xf32> to vector<8x32xbf16>
    %cst_85 = arith.constant dense<0.000000e+00> : vector<8x128xf32>
    %260 = tpu.matmul %259, %179, %cst_85 {dimension_numbers = #tpu.dot_dimension_numbers<[1], [0], [0], [1], [0, 0, 1, 1], [], []>} : vector<8x32xbf16>, vector<32x128xbf16>, vector<8x128xf32> -> vector<8x128xf32>
    %261 = arith.addf %258, %260 : vector<8x128xf32>
    %262 = arith.negf %261 : vector<8x128xf32>
    %263 = math.exp %262 : vector<8x128xf32>
    %cst_86 = arith.constant 1.000000e+00 : f32
    %264 = vector.broadcast %cst_86 : f32 to vector<8x128xf32>
    %265 = arith.addf %264, %263 : vector<8x128xf32>
    %266 = arith.divf %264, %265 : vector<8x128xf32>
    %267 = math.tanh %261 : vector<8x128xf32>
    %268 = vector.extract_strided_slice %266 {offsets = [0, 0], sizes = [8, 32], strides = [1, 1]} : vector<8x128xf32> to vector<8x32xf32>
    %269 = vector.extract_strided_slice %266 {offsets = [0, 32], sizes = [8, 32], strides = [1, 1]} : vector<8x128xf32> to vector<8x32xf32>
    %270 = vector.extract_strided_slice %267 {offsets = [0, 64], sizes = [8, 32], strides = [1, 1]} : vector<8x128xf32> to vector<8x32xf32>
    %271 = vector.extract_strided_slice %266 {offsets = [0, 96], sizes = [8, 32], strides = [1, 1]} : vector<8x128xf32> to vector<8x32xf32>
    %272 = arith.mulf %269, %255 : vector<8x32xf32>
    %273 = arith.mulf %268, %270 : vector<8x32xf32>
    %274 = arith.addf %272, %273 : vector<8x32xf32>
    %275 = math.tanh %274 : vector<8x32xf32>
    %276 = arith.mulf %271, %275 : vector<8x32xf32>
    %c40_87 = arith.constant 40 : index
    %c0_88 = arith.constant 0 : index
    %277 = vector.load %arg10[%c40_87, %c0_88] : memref<64x128xf32, #tpu.memory_space<vmem>>, vector<8x128xf32>
    %278 = arith.truncf %276 : vector<8x32xf32> to vector<8x32xbf16>
    %cst_89 = arith.constant dense<0.000000e+00> : vector<8x128xf32>
    %279 = tpu.matmul %278, %179, %cst_89 {dimension_numbers = #tpu.dot_dimension_numbers<[1], [0], [0], [1], [0, 0, 1, 1], [], []>} : vector<8x32xbf16>, vector<32x128xbf16>, vector<8x128xf32> -> vector<8x128xf32>
    %280 = arith.addf %277, %279 : vector<8x128xf32>
    %281 = arith.negf %280 : vector<8x128xf32>
    %282 = math.exp %281 : vector<8x128xf32>
    %cst_90 = arith.constant 1.000000e+00 : f32
    %283 = vector.broadcast %cst_90 : f32 to vector<8x128xf32>
    %284 = arith.addf %283, %282 : vector<8x128xf32>
    %285 = arith.divf %283, %284 : vector<8x128xf32>
    %286 = math.tanh %280 : vector<8x128xf32>
    %287 = vector.extract_strided_slice %285 {offsets = [0, 0], sizes = [8, 32], strides = [1, 1]} : vector<8x128xf32> to vector<8x32xf32>
    %288 = vector.extract_strided_slice %285 {offsets = [0, 32], sizes = [8, 32], strides = [1, 1]} : vector<8x128xf32> to vector<8x32xf32>
    %289 = vector.extract_strided_slice %286 {offsets = [0, 64], sizes = [8, 32], strides = [1, 1]} : vector<8x128xf32> to vector<8x32xf32>
    %290 = vector.extract_strided_slice %285 {offsets = [0, 96], sizes = [8, 32], strides = [1, 1]} : vector<8x128xf32> to vector<8x32xf32>
    %291 = arith.mulf %288, %274 : vector<8x32xf32>
    %292 = arith.mulf %287, %289 : vector<8x32xf32>
    %293 = arith.addf %291, %292 : vector<8x32xf32>
    %294 = math.tanh %293 : vector<8x32xf32>
    %295 = arith.mulf %290, %294 : vector<8x32xf32>
    %c48_91 = arith.constant 48 : index
    %c0_92 = arith.constant 0 : index
    %296 = vector.load %arg10[%c48_91, %c0_92] : memref<64x128xf32, #tpu.memory_space<vmem>>, vector<8x128xf32>
    %297 = arith.truncf %295 : vector<8x32xf32> to vector<8x32xbf16>
    %cst_93 = arith.constant dense<0.000000e+00> : vector<8x128xf32>
    %298 = tpu.matmul %297, %179, %cst_93 {dimension_numbers = #tpu.dot_dimension_numbers<[1], [0], [0], [1], [0, 0, 1, 1], [], []>} : vector<8x32xbf16>, vector<32x128xbf16>, vector<8x128xf32> -> vector<8x128xf32>
    %299 = arith.addf %296, %298 : vector<8x128xf32>
    %300 = arith.negf %299 : vector<8x128xf32>
    %301 = math.exp %300 : vector<8x128xf32>
    %cst_94 = arith.constant 1.000000e+00 : f32
    %302 = vector.broadcast %cst_94 : f32 to vector<8x128xf32>
    %303 = arith.addf %302, %301 : vector<8x128xf32>
    %304 = arith.divf %302, %303 : vector<8x128xf32>
    %305 = math.tanh %299 : vector<8x128xf32>
    %306 = vector.extract_strided_slice %304 {offsets = [0, 0], sizes = [8, 32], strides = [1, 1]} : vector<8x128xf32> to vector<8x32xf32>
    %307 = vector.extract_strided_slice %304 {offsets = [0, 32], sizes = [8, 32], strides = [1, 1]} : vector<8x128xf32> to vector<8x32xf32>
    %308 = vector.extract_strided_slice %305 {offsets = [0, 64], sizes = [8, 32], strides = [1, 1]} : vector<8x128xf32> to vector<8x32xf32>
    %309 = vector.extract_strided_slice %304 {offsets = [0, 96], sizes = [8, 32], strides = [1, 1]} : vector<8x128xf32> to vector<8x32xf32>
    %310 = arith.mulf %307, %293 : vector<8x32xf32>
    %311 = arith.mulf %306, %308 : vector<8x32xf32>
    %312 = arith.addf %310, %311 : vector<8x32xf32>
    %313 = math.tanh %312 : vector<8x32xf32>
    %314 = arith.mulf %309, %313 : vector<8x32xf32>
    %c56_95 = arith.constant 56 : index
    %c0_96 = arith.constant 0 : index
    %315 = vector.load %arg10[%c56_95, %c0_96] : memref<64x128xf32, #tpu.memory_space<vmem>>, vector<8x128xf32>
    %316 = arith.truncf %314 : vector<8x32xf32> to vector<8x32xbf16>
    %cst_97 = arith.constant dense<0.000000e+00> : vector<8x128xf32>
    %317 = tpu.matmul %316, %179, %cst_97 {dimension_numbers = #tpu.dot_dimension_numbers<[1], [0], [0], [1], [0, 0, 1, 1], [], []>} : vector<8x32xbf16>, vector<32x128xbf16>, vector<8x128xf32> -> vector<8x128xf32>
    %318 = arith.addf %315, %317 : vector<8x128xf32>
    %319 = arith.negf %318 : vector<8x128xf32>
    %320 = math.exp %319 : vector<8x128xf32>
    %cst_98 = arith.constant 1.000000e+00 : f32
    %321 = vector.broadcast %cst_98 : f32 to vector<8x128xf32>
    %322 = arith.addf %321, %320 : vector<8x128xf32>
    %323 = arith.divf %321, %322 : vector<8x128xf32>
    %324 = math.tanh %318 : vector<8x128xf32>
    %325 = vector.extract_strided_slice %323 {offsets = [0, 0], sizes = [8, 32], strides = [1, 1]} : vector<8x128xf32> to vector<8x32xf32>
    %326 = vector.extract_strided_slice %323 {offsets = [0, 32], sizes = [8, 32], strides = [1, 1]} : vector<8x128xf32> to vector<8x32xf32>
    %327 = vector.extract_strided_slice %324 {offsets = [0, 64], sizes = [8, 32], strides = [1, 1]} : vector<8x128xf32> to vector<8x32xf32>
    %328 = vector.extract_strided_slice %323 {offsets = [0, 96], sizes = [8, 32], strides = [1, 1]} : vector<8x128xf32> to vector<8x32xf32>
    %329 = arith.mulf %326, %312 : vector<8x32xf32>
    %330 = arith.mulf %325, %327 : vector<8x32xf32>
    %331 = arith.addf %329, %330 : vector<8x32xf32>
    %332 = math.tanh %331 : vector<8x32xf32>
    %333 = arith.mulf %328, %332 : vector<8x32xf32>
    %c8_99 = arith.constant 8 : index
    %c0_100 = arith.constant 0 : index
    %334 = vector.load %arg12[%c8_99, %c0_100] : memref<16x32xf32, #tpu.memory_space<vmem>>, vector<8x32xf32>
    tpu.vector_store %arg12[%c8_99, %c0_100], %333 {strides = array<i32>} : memref<16x32xf32, #tpu.memory_space<vmem>>, vector<8x32xf32>,
    %c0_101 = arith.constant 0 : index
    %c0_102 = arith.constant 0 : index
    %335 = vector.load %arg12[%c0_101, %c0_102] : memref<16x32xf32, #tpu.memory_space<vmem>>, vector<16x32xf32>
    %336 = arith.truncf %335 : vector<16x32xf32> to vector<16x32xbf16>
    %c0_103 = arith.constant 0 : index
    %c0_104 = arith.constant 0 : index
    %337 = vector.load %arg7[%c0_103, %c0_104] : memref<32x128xbf16, #tpu.memory_space<vmem>>, vector<32x128xbf16>
    %cst_105 = arith.constant dense<0.000000e+00> : vector<16x128xf32>
    %338 = tpu.matmul %336, %337, %cst_105 {dimension_numbers = #tpu.dot_dimension_numbers<[1], [0], [0], [1], [0, 0, 1, 1], [], []>} : vector<16x32xbf16>, vector<32x128xbf16>, vector<16x128xf32> -> vector<16x128xf32>
    %c0_106 = arith.constant 0 : index
    %c0_107 = arith.constant 0 : index
    %339 = vector.load %arg8[%c0_106, %c0_107] : memref<1x128xf32, #tpu.memory_space<vmem>>, vector<1x128xf32>
    %340 = vector.broadcast %339 : vector<1x128xf32> to vector<16x128xf32>
    %341 = arith.addf %338, %340 : vector<16x128xf32>
    %c0_108 = arith.constant 0 : index
    %c0_109 = arith.constant 0 : index
    %342 = vector.load %arg9[%c0_108, %c0_109] : memref<16x128xf32, #tpu.memory_space<vmem>>, vector<16x128xf32>
    tpu.vector_store %arg9[%c0_108, %c0_109], %341 {strides = array<i32>} : memref<16x128xf32, #tpu.memory_space<vmem>>, vector<16x128xf32>,
    return
  }
}

</mosaic_0001>

<bundles_post_ra>
// kernel: lstm_forward.1
= control target key start
LH: loop header
LB: loop body
LE: loop exit
PB: predicated region body
PF: predicated region fallthrough
CT: control target
= control target key end

     0   :  { %v2015_v0 = vmov 0.0   ;;  %vm2016_vm0 = vmmov 0   ;;  %vm76_vm1 = vcmask 130048   ;;  %v2017_v6 = vmov 0   ;;  %s2018_s19 = smov 64   ;;  %s2436_s1 = inlined_call_operand.vmem [shape: bf16[16,128], index: 1, kind: input, shape index: {}]   ;;  %s2437_s3 = inlined_call_operand.vmem [shape: bf16[32,128], index: 3, kind: input, shape index: {}]   ;;  %s2438_s0 = inlined_call_operand.vmem [shape: bf16[64,16], index: 0, kind: input, shape index: {}]   ;;  %s2439_s2 = inlined_call_operand.vmem [shape: f32[1,128], index: 2, kind: input, shape index: {}]   ;;  %s2440_s4 = inlined_call_operand.vmem [shape: bf16[32,128], index: 4, kind: input, shape index: {}]   ;;  %s2441_s6 = inlined_call_operand.vmem [shape: bf16[32,128], index: 6, kind: input, shape index: {}]   ;;  %s2442_s5 = inlined_call_operand.vmem [shape: f32[1,128], index: 5, kind: input, shape index: {}]   ;;  %s2443_s7 = inlined_call_operand.vmem [shape: bf16[32,128], index: 7, kind: input, shape index: {}]   ;;  %s2444_s8 = inlined_call_operand.vmem [shape: f32[1,128], index: 8, kind: input, shape index: {}]   ;;  %s2445_s9 = inlined_call_operand.vmem [shape: f32[16,128], index: 9, kind: output, shape index: {}]  }
   0x1   :  { %1721 = vmatprep.subr.bf16.mxu1 %v2015_v0  ;;  %v1874_v1 = vld [vmem:[%s2436_s1] sm:$0xff]   ;;  %1725 = vmatprep.mubr.msk.bf16.mxu1 %vm2016_vm0, %v2015_v0  ;;  %v1877_v4 = vld [vmem:[%s2438_s0 + $0x8] sm:$0xff]   ;;  %vm179_vm2 = vcmask 261120   ;;  %v1879_v49 = vld [vmem:[%s2438_s0 + $0x10] sm:$0xff]  }
   0x2   :  { %v2079_v2 = vld [vmem:[%s2437_s3] sm:$0xff]   ;;  %1711 = vmatprep.subr.bf16.mxu0 %v1874_v1  ;;  %v2093_v5 = vld [vmem:[%s2437_s3 + $0x8] sm:$0xff]   ;;  %v1880_v50 = vld [vmem:[%s2438_s0 + $0x18] sm:$0xff]  }
   0x3   :  { %v1876_v3 = vld [vmem:[%s2438_s0] sm:$0xff]   ;;  %1722 = vmatpush3.bf16.msra.mxu1 %v2079_v2  ;;  %1712 = vmatpush3.bf16.msra.mxu0 %v1874_v1 }
   0x4   :  { %1713 = vmatprep.mubr.msk.bf16.mxu0 %vm76_vm1, %v1876_v3  ;;  %1723 = vmatprep.subr.bf16.mxu1 %v2015_v0  ;;  %v2113_v7 = vld [vmem:[%s2439_s2] ss:$0 sm:$0xff]  ;;  %s2019_s2 = smov 32  }
   0x5   :  { %1737 = vmatprep.subr.bf16.mxu0 %v2015_v0 }
   0x6   :  { %1714 = vmatmul.mubr.msk.bf16.vlgmr.msra.gmra.mrb[0].mxu0 %vm76_vm1, %v1877_v4 }
   0x7   :  { %1724 = vmatpush3.bf16.msra.mxu1 %v2093_v5  ;;  %1738 = vmatpush3.bf16.msra.mxu0 %v2079_v2 }
   0x8   :  { %1729 = vmatprep.subr.bf16.mxu1 %v2015_v0  ;;  %1739 = vmatprep.subr.bf16.mxu0 %v2015_v0 }
   0x9   :  { %1717 = vmatprep.mubr.msk.bf16.mxu0 %vm76_vm1, %v1879_v49 }
   0xa   :  { %1726 = vmatmul.mubr.bf16.vlgmr.msra.gmra.mrb[0].mxu1 %v2017_v6 }
   0xb   :  { %1730 = vmatpush3.bf16.msra.mxu1 %v2079_v2  ;;  %1733 = vmatprep.mubr.msk.bf16.mxu1 %vm2016_vm0, %v2015_v0 }
   0xc   :  { %1731 = vmatprep.subr.bf16.mxu1 %v2015_v0  ;;  %1740 = vmatpush3.bf16.msra.mxu0 %v2093_v5 }
   0xd   :  { %1753 = vmatprep.subr.bf16.mxu0 %v2015_v0 }
   0xe   :  { %1718 = vmatmul.mubr.msk.bf16.gmra.mrb[4].mxu0 %vm76_vm1, %v1880_v50 }
   0xf   :  { %1732 = vmatpush3.bf16.msra.mxu1 %v2093_v5  ;;  %1741 = vmatprep.mubr.msk.bf16.mxu0 %vm2016_vm0, %v2015_v0 }
  0x10   :  { %1745 = vmatprep.subr.bf16.mxu1 %v2015_v0 }
  0xd9   :  { %v2115_v8 = vpop.f32.mrb[0].mxu0 }
  0xda   :  { %v123_v9 = vpop.f32.mrb[1].mxu0  ;;  %v132_v60 = vadd.f32 %v2115_v8, %v2113_v7 }
  0xdb   :  { %v124_v10 = vadd.f32 %v2113_v7, %v123_v9  ;;  %v2118_v11 = vpop.f32.mrb[2].mxu0 }
  0xdc   :  { %v126_v12 = vpop.f32.mrb[3].mxu0 }
  0xdd   :  { %v217_v13 = vpop.f32.mrb[0].mxu1  ;;  %v127_v33 = vadd.f32 %v2113_v7, %v126_v12 }
  0xde   :  { %v223_v14 = vadd.f32 %v217_v13, %v124_v10  ;;  %v1727_v15 = vpop.f32.mrb[1].mxu1 }
  0xdf   :  { %v220_v16 = vpop.f32.mrb[2].mxu1 }
  0xe0   :  { %1887 = vtanh.f32 %v223_v14  ;;  %v1728_v17 = vpop.f32.mrb[3].mxu1  ;;  %v1606_v19 = vmul.f32 -1.442695, %v223_v14 }
  0xe1   :  { %v2154_v55 = vpop.f32.mrb[4].mxu0 }
  0xe2   :  { %1889 = vpow2.f32 %v1606_v19  ;;  %v2156_v56 = vpop.f32.mrb[5].mxu0 }
  0xe3   :  { %v2158_v57 = vpop.f32.mrb[6].mxu0 }
  0xe4   :  { %v2160_v58 = vpop.f32.mrb[7].mxu0 }
  0xea   :  { %v1888_v18 = vpop.eup %1887 }
  0xeb   :  { %233 = vrot.lane.b32.xlu0 %v1888_v18, %s2018_s19 }
  0xec   :  { %v1890_v20 = vpop.eup %1889 }
  0xed   :  { %v227_v21 = vadd.f32 1.0, %v1890_v20 }
  0xef   :  { %1891 = vrcp.f32 %v227_v21 }
  0xf9   :  { %v1892_v22 = vpop.eup %1891 }
  0xfa   :  { %v231_v25 = vmul.f32 0.0, %v1892_v22 }
 0x15d   :  { %v234_v23 = vpop.permute.xlu0 %233 }
 0x15e   :  { %v236_v24 = vmul.f32 %v1892_v22, %v234_v23  ;;  %v135_v23 = vadd.f32 %v2118_v11, %v2113_v7 }
 0x160   :  { %238 = vrot.lane.b32.xlu0 %v236_v24, %s2019_s2 }
 0x1d2   :  { %v239_v26 = vpop.permute.xlu0 %238 }
 0x1d3   :  { %v241_v27 = vadd.f32 %v239_v26, %v231_v25 }
 0x1d5   :  { %1893 = vtanh.f32 %v241_v27 }
 0x1df   :  { %v1894_v28 = vpop.eup %1893 }
 0x1e0   :  { %244 = vrot.lane.b32.xlu1 %v1894_v28, %s2018_s19 }
 0x252   :  { %v245_v29 = vpop.permute.xlu1 %244 }
 0x253   :  { %v2123_v30 = vmul.f32 %v1892_v22, %v245_v29 }
 0x255   :  { %v254_v31 = vpack.c.bf16 %v2123_v30, %v2123_v30 }
 0x257   :  { %256 = vrot.lane.b32.xlu1 %v254_v31, %s2019_s2 }
 0x2c9   :  { %v257_v32 = vpop.permute.xlu1 %256 }
 0x2ca   :  { %1734 = vmatmul.mubr.msk.bf16.vlgmr.msra.gmra.mrb[4].mxu1 %vm179_vm2, %v257_v32 }
 0x2cb   :  { %1746 = vmatpush3.bf16.msra.mxu1 %v2079_v2  ;;  %1749 = vmatprep.mubr.msk.bf16.mxu1 %vm2016_vm0, %v2015_v0 }
 0x2cc   :  { %1747 = vmatprep.subr.bf16.mxu1 %v2015_v0 }
 0x2cf   :  { %1748 = vmatpush3.bf16.msra.mxu1 %v2093_v5 }
 0x2d0   :  { %1761 = vmatprep.subr.bf16.mxu1 %v2015_v0 }
 0x39d   :  { %v295_v34 = vpop.f32.mrb[4].mxu1 }
 0x39e   :  { %v301_v35 = vadd.f32 %v295_v34, %v127_v33  ;;  %v1735_v36 = vpop.f32.mrb[5].mxu1 }
 0x39f   :  { %v298_v37 = vpop.f32.mrb[6].mxu1 }
 0x3a0   :  { %1895 = vtanh.f32 %v301_v35  ;;  %v1736_v38 = vpop.f32.mrb[7].mxu1  ;;  %v1608_v40 = vmul.f32 -1.442695, %v301_v35 }
 0x3a2   :  { %1897 = vpow2.f32 %v1608_v40 }
 0x3aa   :  { %v1896_v39 = vpop.eup %1895 }
 0x3ab   :  { %311 = vrot.lane.b32.xlu0 %v1896_v39, %s2018_s19 }
 0x3ac   :  { %v1898_v41 = vpop.eup %1897 }
 0x3ad   :  { %v305_v42 = vadd.f32 1.0, %v1898_v41 }
 0x3af   :  { %1899 = vrcp.f32 %v305_v42 }
 0x3b9   :  { %v1900_v43 = vpop.eup %1899 }
 0x3ba   :  { %v309_v46 = vmul.f32 %v1900_v43, %v241_v27 }
 0x41d   :  { %v312_v44 = vpop.permute.xlu0 %311 }
 0x41e   :  { %v314_v45 = vmul.f32 %v1900_v43, %v312_v44  ;;  %v140_v44 = vadd.f32 %v2113_v7, %v2156_v56 }
 0x420   :  { %316 = vrot.lane.b32.xlu1 %v314_v45, %s2019_s2 }
 0x492   :  { %v317_v47 = vpop.permute.xlu1 %316 }
 0x493   :  { %v319_v48 = vadd.f32 %v317_v47, %v309_v46 }
 0x495   :  { %1901 = vtanh.f32 %v319_v48 }
 0x49f   :  { %v1902_v51 = vpop.eup %1901 }
 0x4a0   :  { %322 = vrot.lane.b32.xlu0 %v1902_v51, %s2018_s19 }
 0x512   :  { %v323_v52 = vpop.permute.xlu0 %322 }
 0x513   :  { %v2149_v53 = vmul.f32 %v1900_v43, %v323_v52 }
 0x515   :  { %v332_v54 = vpack.c.bf16 %v2149_v53, %v2149_v53 }
 0x517   :  { %334 = vrot.lane.b32.xlu1 %v332_v54, %s2019_s2 }
 0x589   :  { %v335_v59 = vpop.permute.xlu1 %334 }
 0x58a   :  { %1742 = vmatmul.mubr.msk.bf16.vlgmr.msra.gmra.mrb[8].mxu0 %vm179_vm2, %v335_v59 }
 0x58b   :  { %1754 = vmatpush3.bf16.msra.mxu0 %v2079_v2  ;;  %1757 = vmatprep.mubr.msk.bf16.mxu0 %vm2016_vm0, %v2015_v0 }
 0x58c   :  { %1755 = vmatprep.subr.bf16.mxu0 %v2015_v0 }
 0x58f   :  { %1756 = vmatpush3.bf16.msra.mxu0 %v2093_v5 }
 0x590   :  { %1769 = vmatprep.subr.bf16.mxu0 %v2015_v0 }
 0x65d   :  { %v373_v61 = vpop.f32.mrb[8].mxu0 }
 0x65e   :  { %v379_v62 = vadd.f32 %v373_v61, %v132_v60  ;;  %v1743_v63 = vpop.f32.mrb[9].mxu0 }
 0x65f   :  { %v376_v1 = vpop.f32.mrb[10].mxu0 }
 0x660   :  { %1903 = vtanh.f32 %v379_v62  ;;  %v1744_v3 = vpop.f32.mrb[11].mxu0  ;;  %v1610_v9 = vmul.f32 -1.442695, %v379_v62 }
 0x662   :  { %1905 = vpow2.f32 %v1610_v9 }
 0x66a   :  { %v1904_v4 = vpop.eup %1903 }
 0x66b   :  { %389 = vrot.lane.b32.xlu0 %v1904_v4, %s2018_s19 }
 0x66c   :  { %v1906_v10 = vpop.eup %1905 }
 0x66d   :  { %v383_v12 = vadd.f32 1.0, %v1906_v10 }
 0x66f   :  { %1907 = vrcp.f32 %v383_v12  ;;  %v143_v12 = vadd.f32 %v2113_v7, %v2160_v58 }
 0x679   :  { %v1908_v13 = vpop.eup %1907 }
 0x67a   :  { %v387_v8 = vmul.f32 %v1908_v13, %v319_v48 }
 0x6dd   :  { %v390_v14 = vpop.permute.xlu0 %389 }
 0x6de   :  { %v392_v15 = vmul.f32 %v1908_v13, %v390_v14 }
 0x6e0   :  { %394 = vrot.lane.b32.xlu1 %v392_v15, %s2019_s2 }
 0x752   :  { %v395_v16 = vpop.permute.xlu1 %394 }
 0x753   :  { %v397_v17 = vadd.f32 %v395_v16, %v387_v8 }
 0x755   :  { %1909 = vtanh.f32 %v397_v17 }
 0x75f   :  { %v1910_v18 = vpop.eup %1909 }
 0x760   :  { %400 = vrot.lane.b32.xlu0 %v1910_v18, %s2018_s19 }
 0x7d2   :  { %v401_v19 = vpop.permute.xlu0 %400 }
 0x7d3   :  { %v2174_v20 = vmul.f32 %v1908_v13, %v401_v19 }
 0x7d5   :  { %v410_v21 = vpack.c.bf16 %v2174_v20, %v2174_v20 }
 0x7d7   :  { %412 = vrot.lane.b32.xlu1 %v410_v21, %s2019_s2 }
 0x849   :  { %v413_v22 = vpop.permute.xlu1 %412 }
 0x84a   :  { %1750 = vmatmul.mubr.msk.bf16.vlgmr.msra.gmra.mrb[8].mxu1 %vm179_vm2, %v413_v22 }
 0x84b   :  { %1762 = vmatpush3.bf16.msra.mxu1 %v2079_v2  ;;  %1765 = vmatprep.mubr.msk.bf16.mxu1 %vm2016_vm0, %v2015_v0 }
 0x84c   :  { %1763 = vmatprep.subr.bf16.mxu1 %v2015_v0 }
 0x84f   :  { %1764 = vmatpush3.bf16.msra.mxu1 %v2093_v5 }
 0x850   :  { %1777 = vmatprep.subr.bf16.mxu1 %v2015_v0 }
 0x91d   :  { %v451_v24 = vpop.f32.mrb[8].mxu1 }
 0x91e   :  { %v457_v25 = vadd.f32 %v451_v24, %v135_v23  ;;  %v1751_v26 = vpop.f32.mrb[9].mxu1 }
 0x91f   :  { %v454_v27 = vpop.f32.mrb[10].mxu1 }
 0x920   :  { %1911 = vtanh.f32 %v457_v25  ;;  %v1752_v28 = vpop.f32.mrb[11].mxu1  ;;  %v1612_v31 = vmul.f32 -1.442695, %v457_v25 }
 0x922   :  { %1913 = vpow2.f32 %v1612_v31  ;;  %v148_v31 = vadd.f32 %v2154_v55, %v2113_v7 }
 0x92a   :  { %v1912_v29 = vpop.eup %1911 }
 0x92b   :  { %467 = vrot.lane.b32.xlu0 %v1912_v29, %s2018_s19 }
 0x92c   :  { %v1914_v32 = vpop.eup %1913 }
 0x92d   :  { %v461_v33 = vadd.f32 1.0, %v1914_v32 }
 0x92f   :  { %1915 = vrcp.f32 %v461_v33 }
 0x939   :  { %v1916_v34 = vpop.eup %1915 }
 0x93a   :  { %v465_v11 = vmul.f32 %v1916_v34, %v397_v17 }
 0x99d   :  { %v468_v35 = vpop.permute.xlu0 %467 }
 0x99e   :  { %v470_v36 = vmul.f32 %v1916_v34, %v468_v35 }
 0x9a0   :  { %472 = vrot.lane.b32.xlu1 %v470_v36, %s2019_s2 }
 0xa12   :  { %v473_v37 = vpop.permute.xlu1 %472 }
 0xa13   :  { %v475_v38 = vadd.f32 %v473_v37, %v465_v11 }
 0xa15   :  { %1917 = vtanh.f32 %v475_v38 }
 0xa1f   :  { %v1918_v39 = vpop.eup %1917 }
 0xa20   :  { %478 = vrot.lane.b32.xlu0 %v1918_v39, %s2018_s19 }
 0xa92   :  { %v479_v40 = vpop.permute.xlu0 %478 }
 0xa93   :  { %v2191_v41 = vmul.f32 %v1916_v34, %v479_v40 }
 0xa95   :  { %v488_v42 = vpack.c.bf16 %v2191_v41, %v2191_v41 }
 0xa97   :  { %490 = vrot.lane.b32.xlu1 %v488_v42, %s2019_s2 }
 0xb09   :  { %v491_v43 = vpop.permute.xlu1 %490 }
 0xb0a   :  { %1758 = vmatmul.mubr.msk.bf16.vlgmr.msra.gmra.mrb[12].mxu0 %vm179_vm2, %v491_v43 }
 0xb0b   :  { %1770 = vmatpush3.bf16.msra.mxu0 %v2079_v2  ;;  %1773 = vmatprep.mubr.msk.bf16.mxu0 %vm2016_vm0, %v2015_v0 }
 0xb0c   :  { %1771 = vmatprep.subr.bf16.mxu0 %v2015_v0 }
 0xb0f   :  { %1772 = vmatpush3.bf16.msra.mxu0 %v2093_v5 }
 0xbdd   :  { %v529_v45 = vpop.f32.mrb[12].mxu0 }
 0xbde   :  { %v535_v46 = vadd.f32 %v529_v45, %v140_v44  ;;  %v1759_v47 = vpop.f32.mrb[13].mxu0 }
 0xbdf   :  { %v532_v48 = vpop.f32.mrb[14].mxu0 }
 0xbe0   :  { %1919 = vtanh.f32 %v535_v46  ;;  %v1760_v49 = vpop.f32.mrb[15].mxu0  ;;  %v1614_v51 = vmul.f32 -1.442695, %v535_v46  ;;  %v1881_v48 = vld [vmem:[%s2440_s4] sm:$0xff]  }
 0xbe1   :  { %1785 = vmatprep.subr.bf16.mxu0 %v1881_v48 }
 0xbe2   :  { %1921 = vpow2.f32 %v1614_v51 }
 0xbea   :  { %v1920_v50 = vpop.eup %1919 }
 0xbeb   :  { %545 = vrot.lane.b32.xlu0 %v1920_v50, %s2018_s19 }
 0xbec   :  { %v1922_v52 = vpop.eup %1921 }
 0xbed   :  { %v539_v54 = vadd.f32 1.0, %v1922_v52 }
 0xbef   :  { %1923 = vrcp.f32 %v539_v54 }
 0xbf9   :  { %v1924_v59 = vpop.eup %1923 }
 0xbfa   :  { %v543_v56 = vmul.f32 %v1924_v59, %v475_v38 }
 0xc5d   :  { %v546_v60 = vpop.permute.xlu0 %545 }
 0xc5e   :  { %v548_v61 = vmul.f32 %v1924_v59, %v546_v60 }
 0xc60   :  { %550 = vrot.lane.b32.xlu1 %v548_v61, %s2019_s2 }
 0xcd2   :  { %v551_v62 = vpop.permute.xlu1 %550 }
 0xcd3   :  { %v553_v63 = vadd.f32 %v551_v62, %v543_v56  ;;  %v2266_v62 = vld [vmem:[%s2441_s6] sm:$0xff]  }
 0xcd5   :  { %1925 = vtanh.f32 %v553_v63 }
 0xcdf   :  { %v1926_v1 = vpop.eup %1925 }
 0xce0   :  { %556 = vrot.lane.b32.xlu0 %v1926_v1, %s2018_s19 }
 0xd52   :  { %v557_v3 = vpop.permute.xlu0 %556 }
 0xd53   :  { %v2207_v4 = vmul.f32 %v1924_v59, %v557_v3 }
 0xd55   :  { %v566_v9 = vpack.c.bf16 %v2207_v4, %v2207_v4 }
 0xd57   :  { %568 = vrot.lane.b32.xlu1 %v566_v9, %s2019_s2 }
 0xdc9   :  { %v569_v10 = vpop.permute.xlu1 %568 }
 0xdca   :  { %1766 = vmatmul.mubr.msk.bf16.vlgmr.msra.gmra.mrb[12].mxu1 %vm179_vm2, %v569_v10 }
 0xdcb   :  { %1778 = vmatpush3.bf16.msra.mxu1 %v2079_v2  ;;  %1781 = vmatprep.mubr.msk.bf16.mxu1 %vm2016_vm0, %v2015_v0 }
 0xdcc   :  { %1779 = vmatprep.subr.bf16.mxu1 %v2015_v0 }
 0xdcf   :  { %1780 = vmatpush3.bf16.msra.mxu1 %v2093_v5 }
 0xdd0   :  { %1797 = vmatprep.subr.bf16.mxu1 %v2015_v0 }
 0xe9d   :  { %v607_v13 = vpop.f32.mrb[12].mxu1 }
 0xe9e   :  { %v613_v14 = vadd.f32 %v607_v13, %v143_v12  ;;  %v1767_v15 = vpop.f32.mrb[13].mxu1 }
 0xe9f   :  { %v610_v8 = vpop.f32.mrb[14].mxu1 }
 0xea0   :  { %1927 = vtanh.f32 %v613_v14  ;;  %v1768_v16 = vpop.f32.mrb[15].mxu1  ;;  %v1616_v2 = vmul.f32 -1.442695, %v613_v14 }
 0xea2   :  { %1929 = vpow2.f32 %v1616_v2 }
 0xeaa   :  { %v1928_v17 = vpop.eup %1927 }
 0xeab   :  { %623 = vrot.lane.b32.xlu0 %v1928_v17, %s2018_s19  ;;  %v2303_v17 = vld [vmem:[%s2442_s5] ss:$0 sm:$0xff] }
 0xeac   :  { %v1930_v18 = vpop.eup %1929 }
 0xead   :  { %v617_v19 = vadd.f32 1.0, %v1930_v18 }
 0xeaf   :  { %1931 = vrcp.f32 %v617_v19 }
 0xeb9   :  { %v1932_v5 = vpop.eup %1931 }
 0xeba   :  { %v621_v58 = vmul.f32 %v1932_v5, %v553_v63  ;;  %v2274_v63 = vld [vmem:[%s2441_s6 + $0x8] sm:$0xff]  }
 0xf1d   :  { %v624_v21 = vpop.permute.xlu0 %623 }
 0xf1e   :  { %v626_v22 = vmul.f32 %v1932_v5, %v624_v21 }
 0xf20   :  { %628 = vrot.lane.b32.xlu1 %v626_v22, %s2019_s2 }
 0xf92   :  { %v629_v23 = vpop.permute.xlu1 %628 }
 0xf93   :  { %v631_v24 = vadd.f32 %v629_v23, %v621_v58 }
 0xf95   :  { %1933 = vtanh.f32 %v631_v24 }
 0xf9f   :  { %v1934_v25 = vpop.eup %1933 }
 0xfa0   :  { %634 = vrot.lane.b32.xlu0 %v1934_v25, %s2018_s19 }
0x1012   :  { %v635_v26 = vpop.permute.xlu0 %634 }
0x1013   :  { %v2224_v27 = vmul.f32 %v1932_v5, %v635_v26 }
0x1015   :  { %v644_v28 = vpack.c.bf16 %v2224_v27, %v2224_v27 }
0x1017   :  { %646 = vrot.lane.b32.xlu1 %v644_v28, %s2019_s2 }
0x1089   :  { %v647_v29 = vpop.permute.xlu1 %646 }
0x108a   :  { %1774 = vmatmul.mubr.msk.bf16.vlgmr.msra.gmra.mrb[16].mxu0 %vm179_vm2, %v647_v29 }
0x108b   :  { %1786 = vmatpush3.bf16.msra.mxu0 %v1881_v48 }
0x115d   :  { %v685_v32 = vpop.f32.mrb[16].mxu0 }
0x115e   :  { %v691_v33 = vadd.f32 %v685_v32, %v148_v31  ;;  %v1775_v34 = vpop.f32.mrb[17].mxu0 }
0x115f   :  { %v688_v35 = vpop.f32.mrb[18].mxu0 }
0x1160   :  { %1935 = vtanh.f32 %v691_v33  ;;  %v1776_v36 = vpop.f32.mrb[19].mxu0  ;;  %v1618_v37 = vmul.f32 -1.442695, %v691_v33 }
0x1162   :  { %1937 = vpow2.f32 %v1618_v37 }
0x116a   :  { %v1936_v11 = vpop.eup %1935 }
0x116b   :  { %701 = vrot.lane.b32.xlu0 %v1936_v11, %s2018_s19 }
0x116c   :  { %v1938_v38 = vpop.eup %1937 }
0x116d   :  { %v695_v39 = vadd.f32 1.0, %v1938_v38 }
0x116f   :  { %1939 = vrcp.f32 %v695_v39 }
0x1179   :  { %v1940_v40 = vpop.eup %1939 }
0x117a   :  { %v699_v55 = vmul.f32 %v1940_v40, %v631_v24 }
0x11dd   :  { %v702_v42 = vpop.permute.xlu0 %701 }
0x11de   :  { %v704_v43 = vmul.f32 %v1940_v40, %v702_v42 }
0x11e0   :  { %706 = vrot.lane.b32.xlu1 %v704_v43, %s2019_s2 }
0x11e4   :  { %249 = vrot.lane.b32.xlu1 %v2123_v30, %s2019_s2  ;;  %v1882_v30 = vld [vmem:[%s2440_s4 + $0x8] sm:$0xff]  }
0x11e5   :  { %1787 = vmatprep.subr.bf16.mxu0 %v1882_v30 }
0x11e6   :  { %1788 = vmatpush3.bf16.msra.mxu0 %v1882_v30 }
0x11e7   :  { %1813 = vmatprep.subr.bf16.mxu0 %v2015_v0 }
0x11e8   :  { %405 = vrot.lane.b32.xlu1 %v2174_v20, %s2019_s2 }
0x1252   :  { %v707_v44 = vpop.permute.xlu1 %706 }
0x1253   :  { %v2238_v45 = vadd.f32 %v707_v44, %v699_v55 }
0x1255   :  { %1941 = vtanh.f32 %v2238_v45 }
0x1256   :  { %v250_v46 = vpop.permute.xlu1 %249 }
0x1257   :  { %252 = vst.msk [vmem:[#allocation3] sm:$0xff] %vm179_vm2, %v250_v46 }
0x125a   :  { %v406_v47 = vpop.permute.xlu1 %405 }
0x125b   :  { %408 = vst.msk [vmem:[#allocation3 + $0x10] sm:$0xff] %vm179_vm2, %v406_v47 }
0x125e   :  { %v800_v59 = vld [vmem:[#allocation3] sm:$0xff] }
0x125f   :  { %v1942_v20 = vpop.eup %1941 }
0x1260   :  { %712 = vrot.lane.b32.xlu0 %v1942_v20, %s2018_s19 }
0x1264   :  { %327 = vrot.lane.b32.xlu0 %v2149_v53, %s2019_s2 }
0x1268   :  { %483 = vrot.lane.b32.xlu0 %v2191_v41, %s2019_s2  ;;  %v802_v41 = vld [vmem:[#allocation3 + $0x10] sm:$0xff] }
0x12d2   :  { %v713_v49 = vpop.permute.xlu0 %712 }
0x12d3   :  { %v2255_v50 = vmul.f32 %v1940_v40, %v713_v49 }
0x12d5   :  { %v722_v51 = vpack.c.bf16 %v2255_v50, %v2255_v50 }
0x12d6   :  { %v328_v52 = vpop.permute.xlu0 %327 }
0x12d7   :  { %330 = vst.msk [vmem:[#allocation3 + $0x8] sm:$0xff] %vm179_vm2, %v328_v52  ;;  %724 = vrot.lane.b32.xlu1 %v722_v51, %s2019_s2 }
0x12da   :  { %v484_v54 = vpop.permute.xlu0 %483 }
0x12db   :  { %486 = vst.msk [vmem:[#allocation3 + $0x18] sm:$0xff] %vm179_vm2, %v484_v54 }
0x12de   :  { %v801_v60 = vld [vmem:[#allocation3 + $0x8] sm:$0xff] }
0x12df   :  { %v808_v53 = vpack.c.bf16 %v801_v60, %v800_v59 }
0x12e1   :  { %1789 = vmatprep.mubr.msk.bf16.mxu0 %vm179_vm2, %v808_v53 }
0x12e2   :  { %v803_v61 = vld [vmem:[#allocation3 + $0x18] sm:$0xff] }
0x12e3   :  { %v809_v56 = vpack.c.bf16 %v803_v61, %v802_v41 }
0x12e5   :  { %1790 = vmatmul.mubr.msk.bf16.vlgmr.msra.gmra.mrb[20].mxu0 %vm179_vm2, %v809_v56 }
0x12e6   :  { %1814 = vmatpush3.bf16.msra.mxu0 %v2266_v62 }
0x12e7   :  { %1815 = vmatprep.subr.bf16.mxu0 %v2015_v0 }
0x12ea   :  { %1816 = vmatpush3.bf16.msra.mxu0 %v2274_v63 }
0x12eb   :  { %1829 = vmatprep.subr.bf16.mxu0 %v2015_v0 }
0x1349   :  { %v725_v1 = vpop.permute.xlu1 %724 }
0x134a   :  { %1782 = vmatmul.mubr.msk.bf16.vlgmr.msra.gmra.mrb[16].mxu1 %vm179_vm2, %v725_v1 }
0x134b   :  { %1798 = vmatpush3.bf16.msra.mxu1 %v2266_v62  ;;  %1801 = vmatprep.mubr.msk.bf16.mxu1 %vm2016_vm0, %v2015_v0 }
0x134c   :  { %1799 = vmatprep.subr.bf16.mxu1 %v2015_v0 }
0x134f   :  { %1800 = vmatpush3.bf16.msra.mxu1 %v2274_v63 }
0x1350   :  { %1805 = vmatprep.subr.bf16.mxu1 %v2015_v0 }
0x1352   :  { %1802 = vmatmul.mubr.bf16.vlgmr.msra.gmra.mrb[20].mxu1 %v2017_v6  ;;  %v151_v6 = vadd.f32 %v2158_v57, %v2113_v7 }
0x1353   :  { %1806 = vmatpush3.bf16.msra.mxu1 %v2266_v62  ;;  %1809 = vmatprep.mubr.msk.bf16.mxu1 %vm2016_vm0, %v2015_v0 }
0x1354   :  { %1807 = vmatprep.subr.bf16.mxu1 %v2015_v0 }
0x1357   :  { %1808 = vmatpush3.bf16.msra.mxu1 %v2274_v63 }
0x1358   :  { %1821 = vmatprep.subr.bf16.mxu1 %v2015_v0 }
0x13b8   :  { %v2292_v3 = vpop.f32.mrb[20].mxu0 }
0x13b9   :  { %v881_v9 = vpop.f32.mrb[21].mxu0 }
0x13ba   :  { %v2294_v10 = vpop.f32.mrb[22].mxu0  ;;  %v882_v2 = vadd.f32 %v2303_v17, %v881_v9 }
0x13bb   :  { %v2296_v12 = vpop.f32.mrb[23].mxu0 }
0x13bc   :  { %v885_v20 = vadd.f32 %v2303_v17, %v2296_v12 }
0x141d   :  { %v763_v13 = vpop.f32.mrb[16].mxu1 }
0x141e   :  { %v769_v14 = vadd.f32 %v763_v13, %v151_v6  ;;  %v1783_v15 = vpop.f32.mrb[17].mxu1 }
0x141f   :  { %v766_v8 = vpop.f32.mrb[18].mxu1 }
0x1420   :  { %v1784_v16 = vpop.f32.mrb[19].mxu1  ;;  %v1620_v34 = vmul.f32 -1.442695, %v769_v14 }
0x1425   :  { %v971_v18 = vpop.f32.mrb[20].mxu1 }
0x1426   :  { %v977_v19 = vadd.f32 %v971_v18, %v882_v2  ;;  %v1803_v5 = vpop.f32.mrb[21].mxu1 }
0x1427   :  { %v974_v21 = vpop.f32.mrb[22].mxu1 }
0x1428   :  { %1943 = vtanh.f32 %v977_v19  ;;  %v1804_v22 = vpop.f32.mrb[23].mxu1  ;;  %v1630_v7 = vmul.f32 -1.442695, %v977_v19 }
0x142a   :  { %1945 = vpow2.f32 %v1630_v7 }
0x1432   :  { %v1944_v58 = vpop.eup %1943 }
0x1433   :  { %987 = vrot.lane.b32.xlu0 %v1944_v58, %s2018_s19 }
0x1434   :  { %v1946_v57 = vpop.eup %1945 }
0x1435   :  { %v981_v23 = vadd.f32 1.0, %v1946_v57 }
0x1437   :  { %1947 = vrcp.f32 %v981_v23 }
0x1441   :  { %v1948_v24 = vpop.eup %1947 }
0x1442   :  { %v985_v28 = vmul.f32 0.0, %v1948_v24 }
0x14a5   :  { %v988_v25 = vpop.permute.xlu0 %987 }
0x14a6   :  { %v990_v26 = vmul.f32 %v1948_v24, %v988_v25  ;;  %v890_v25 = vadd.f32 %v2292_v3, %v2303_v17 }
0x14a8   :  { %992 = vrot.lane.b32.xlu1 %v990_v26, %s2019_s2 }
0x151a   :  { %v993_v29 = vpop.permute.xlu1 %992 }
0x151b   :  { %v995_v31 = vadd.f32 %v993_v29, %v985_v28 }
0x151d   :  { %1949 = vtanh.f32 %v995_v31 }
0x151e   :  { %1951 = vtanh.f32 %v769_v14 }
0x151f   :  { %1953 = vpow2.f32 %v1620_v34 }
0x1527   :  { %v1950_v32 = vpop.eup %1949 }
0x1528   :  { %998 = vrot.lane.b32.xlu0 %v1950_v32, %s2018_s19  ;;  %v1952_v33 = vpop.eup %1951 }
0x1529   :  { %v1954_v35 = vpop.eup %1953 }
0x152a   :  { %v773_v36 = vadd.f32 1.0, %v1954_v35 }
0x152c   :  { %779 = vrot.lane.b32.xlu0 %v1952_v33, %s2018_s19  ;;  %1955 = vrcp.f32 %v773_v36 }
0x1536   :  { %v1956_v39 = vpop.eup %1955 }
0x1537   :  { %v777_v55 = vmul.f32 %v1956_v39, %v2238_v45 }
0x159a   :  { %v999_v11 = vpop.permute.xlu0 %998 }
0x159b   :  { %v1001_v37 = vmul.f32 %v1948_v24, %v999_v11 }
0x159d   :  { %v1003_v38 = vpack.c.bf16 %v1001_v37, %v1001_v37 }
0x159e   :  { %v780_v40 = vpop.permute.xlu0 %779 }
0x159f   :  { %v782_v42 = vmul.f32 %v1956_v39, %v780_v40  ;;  %1005 = vrot.lane.b32.xlu1 %v1003_v38, %s2019_s2 }
0x15a1   :  { %784 = vrot.lane.b32.xlu0 %v782_v42, %s2019_s2 }
0x1611   :  { %v1006_v43 = vpop.permute.xlu1 %1005 }
0x1612   :  { %1810 = vmatmul.mubr.msk.bf16.vlgmr.msra.gmra.mrb[24].mxu1 %vm179_vm2, %v1006_v43 }
0x1613   :  { %v785_v44 = vpop.permute.xlu0 %784  ;;  %1822 = vmatpush3.bf16.msra.mxu1 %v2266_v62  ;;  %1825 = vmatprep.mubr.msk.bf16.mxu1 %vm2016_vm0, %v2015_v0 }
0x1614   :  { %v787_v46 = vadd.f32 %v785_v44, %v777_v55  ;;  %1823 = vmatprep.subr.bf16.mxu1 %v2015_v0 }
0x1616   :  { %1957 = vtanh.f32 %v787_v46 }
0x1617   :  { %1824 = vmatpush3.bf16.msra.mxu1 %v2274_v63 }
0x1618   :  { %1837 = vmatprep.subr.bf16.mxu1 %v2015_v0 }
0x1620   :  { %v1958_v47 = vpop.eup %1957 }
0x1621   :  { %790 = vrot.lane.b32.xlu0 %v1958_v47, %s2018_s19  ;;  %v893_v47 = vadd.f32 %v2294_v10, %v2303_v17 }
0x1625   :  { %561 = vrot.lane.b32.xlu0 %v2207_v4, %s2019_s2 }
0x1629   :  { %717 = vrot.lane.b32.xlu0 %v2255_v50, %s2019_s2 }
0x1693   :  { %v791_v45 = vpop.permute.xlu0 %790 }
0x1694   :  { %v793_v13 = vmul.f32 %v1956_v39, %v791_v45 }
0x1697   :  { %v562_v48 = vpop.permute.xlu0 %561 }
0x1698   :  { %564 = vst.msk [vmem:[#allocation3 + $0x20] sm:$0xff] %vm179_vm2, %v562_v48 }
0x169b   :  { %v718_v30 = vpop.permute.xlu0 %717 }
0x169c   :  { %720 = vst.msk [vmem:[#allocation3 + $0x30] sm:$0xff] %vm179_vm2, %v718_v30 }
0x169f   :  { %v804_v18 = vld [vmem:[#allocation3 + $0x20] sm:$0xff] }
0x16e5   :  { %v1044_v49 = vpop.f32.mrb[24].mxu1 }
0x16e6   :  { %v1050_v51 = vadd.f32 %v1044_v49, %v885_v20  ;;  %v1811_v52 = vpop.f32.mrb[25].mxu1 }
0x16e7   :  { %v1047_v54 = vpop.f32.mrb[26].mxu1 }
0x16e8   :  { %1959 = vtanh.f32 %v1050_v51  ;;  %v1812_v59 = vpop.f32.mrb[27].mxu1  ;;  %v1632_v50 = vmul.f32 -1.442695, %v1050_v51 }
0x16ea   :  { %1961 = vpow2.f32 %v1632_v50 }
0x16f2   :  { %v1960_v4 = vpop.eup %1959 }
0x16f3   :  { %1060 = vrot.lane.b32.xlu1 %v1960_v4, %s2018_s19 }
0x16f4   :  { %v1962_v60 = vpop.eup %1961 }
0x16f5   :  { %v1054_v53 = vadd.f32 1.0, %v1962_v60 }
0x16f7   :  { %1963 = vrcp.f32 %v1054_v53 }
0x1701   :  { %v1964_v41 = vpop.eup %1963 }
0x1702   :  { %v1058_v1 = vmul.f32 %v1964_v41, %v995_v31 }
0x1765   :  { %v1061_v61 = vpop.permute.xlu1 %1060 }
0x1766   :  { %v1063_v56 = vmul.f32 %v1964_v41, %v1061_v61 }
0x1768   :  { %1065 = vrot.lane.b32.xlu1 %v1063_v56, %s2019_s2 }
0x17da   :  { %v1066_v9 = vpop.permute.xlu1 %1065 }
0x17db   :  { %v1068_v12 = vadd.f32 %v1066_v9, %v1058_v1 }
0x17dd   :  { %1965 = vtanh.f32 %v1068_v12 }
0x17e7   :  { %v1966_v6 = vpop.eup %1965 }
0x17e8   :  { %1071 = vrot.lane.b32.xlu1 %v1966_v6, %s2018_s19 }
0x17ec   :  { %639 = vrot.lane.b32.xlu1 %v2224_v27, %s2019_s2  ;;  %v806_v27 = vld [vmem:[#allocation3 + $0x30] sm:$0xff] }
0x17f0   :  { %795 = vrot.lane.b32.xlu1 %v793_v13, %s2019_s2 }
0x185a   :  { %v1072_v14 = vpop.permute.xlu1 %1071 }
0x185b   :  { %v1074_v15 = vmul.f32 %v1964_v41, %v1072_v14 }
0x185d   :  { %v1076_v8 = vpack.c.bf16 %v1074_v15, %v1074_v15 }
0x185e   :  { %v640_v16 = vpop.permute.xlu1 %639 }
0x185f   :  { %642 = vst.msk [vmem:[#allocation3 + $0x28] sm:$0xff] %vm179_vm2, %v640_v16  ;;  %1078 = vrot.lane.b32.xlu0 %v1076_v8, %s2019_s2 }
0x1862   :  { %v796_v2 = vpop.permute.xlu1 %795 }
0x1863   :  { %798 = vst.msk [vmem:[#allocation3 + $0x38] sm:$0xff] %vm179_vm2, %v796_v2  ;;  %799 = vst.msk [vmem:[#allocation4] sm:$0xff] %vm179_vm2, %v796_v2 }
0x1866   :  { %v805_v19 = vld [vmem:[#allocation3 + $0x28] sm:$0xff] }
0x1867   :  { %v810_v5 = vpack.c.bf16 %v805_v19, %v804_v18 }
0x1869   :  { %1793 = vmatprep.mubr.msk.bf16.mxu0 %vm179_vm2, %v810_v5 }
0x186a   :  { %v807_v21 = vld [vmem:[#allocation3 + $0x38] sm:$0xff] }
0x186b   :  { %v811_v22 = vpack.c.bf16 %v807_v21, %v806_v27 }
0x186d   :  { %1794 = vmatmul.mubr.msk.bf16.gmra.mrb[24].mxu0 %vm179_vm2, %v811_v22 }
0x186e   :  { %1817 = vmatprep.mubr.msk.bf16.mxu0 %vm2016_vm0, %v2015_v0 }
0x18d1   :  { %v1079_v58 = vpop.permute.xlu0 %1078 }
0x18d2   :  { %1818 = vmatmul.mubr.msk.bf16.vlgmr.msra.gmra.mrb[28].mxu0 %vm179_vm2, %v1079_v58 }
0x18d3   :  { %1830 = vmatpush3.bf16.msra.mxu0 %v2266_v62  ;;  %1833 = vmatprep.mubr.msk.bf16.mxu0 %vm2016_vm0, %v2015_v0 }
0x18d4   :  { %1831 = vmatprep.subr.bf16.mxu0 %v2015_v0 }
0x18d7   :  { %1832 = vmatpush3.bf16.msra.mxu0 %v2274_v63 }
0x18d8   :  { %1845 = vmatprep.subr.bf16.mxu0 %v2015_v0 }
0x1940   :  { %v2350_v7 = vpop.f32.mrb[24].mxu0 }
0x1941   :  { %v2352_v57 = vpop.f32.mrb[25].mxu0 }
0x1942   :  { %v2354_v23 = vpop.f32.mrb[26].mxu0  ;;  %v898_v6 = vadd.f32 %v2303_v17, %v2352_v57 }
0x1943   :  { %v2356_v24 = vpop.f32.mrb[27].mxu0 }
0x19a5   :  { %v1117_v26 = vpop.f32.mrb[28].mxu0 }
0x19a6   :  { %v1123_v28 = vadd.f32 %v1117_v26, %v890_v25  ;;  %v1819_v29 = vpop.f32.mrb[29].mxu0 }
0x19a7   :  { %v1120_v31 = vpop.f32.mrb[30].mxu0 }
0x19a8   :  { %1967 = vtanh.f32 %v1123_v28  ;;  %v1820_v32 = vpop.f32.mrb[31].mxu0  ;;  %v1634_v34 = vmul.f32 -1.442695, %v1123_v28 }
0x19aa   :  { %1969 = vpow2.f32 %v1634_v34 }
0x19b2   :  { %v1968_v33 = vpop.eup %1967 }
0x19b3   :  { %1133 = vrot.lane.b32.xlu1 %v1968_v33, %s2018_s19  ;;  %v901_v33 = vadd.f32 %v2303_v17, %v2356_v24 }
0x19b4   :  { %v1970_v35 = vpop.eup %1969 }
0x19b5   :  { %v1127_v36 = vadd.f32 1.0, %v1970_v35 }
0x19b7   :  { %1971 = vrcp.f32 %v1127_v36 }
0x19c1   :  { %v1972_v11 = vpop.eup %1971 }
0x19c2   :  { %v1131_v3 = vmul.f32 %v1972_v11, %v1068_v12 }
0x1a25   :  { %v1134_v37 = vpop.permute.xlu1 %1133 }
0x1a26   :  { %v1136_v38 = vmul.f32 %v1972_v11, %v1134_v37 }
0x1a28   :  { %1138 = vrot.lane.b32.xlu0 %v1136_v38, %s2019_s2 }
0x1a9a   :  { %v1139_v39 = vpop.permute.xlu0 %1138 }
0x1a9b   :  { %v1141_v40 = vadd.f32 %v1139_v39, %v1131_v3 }
0x1a9d   :  { %1973 = vtanh.f32 %v1141_v40 }
0x1aa7   :  { %v1974_v42 = vpop.eup %1973 }
0x1aa8   :  { %1144 = vrot.lane.b32.xlu1 %v1974_v42, %s2018_s19 }
0x1b1a   :  { %v1145_v43 = vpop.permute.xlu1 %1144 }
0x1b1b   :  { %v1147_v55 = vmul.f32 %v1972_v11, %v1145_v43 }
0x1b1d   :  { %v1149_v44 = vpack.c.bf16 %v1147_v55, %v1147_v55 }
0x1b1f   :  { %1151 = vrot.lane.b32.xlu0 %v1149_v44, %s2019_s2 }
0x1b91   :  { %v1152_v46 = vpop.permute.xlu0 %1151 }
0x1b92   :  { %1826 = vmatmul.mubr.msk.bf16.vlgmr.msra.gmra.mrb[28].mxu1 %vm179_vm2, %v1152_v46 }
0x1b93   :  { %1838 = vmatpush3.bf16.msra.mxu1 %v2266_v62  ;;  %1841 = vmatprep.mubr.msk.bf16.mxu1 %vm2016_vm0, %v2015_v0 }
0x1b94   :  { %1839 = vmatprep.subr.bf16.mxu1 %v2015_v0 }
0x1b97   :  { %1840 = vmatpush3.bf16.msra.mxu1 %v2274_v63 }
0x1b98   :  { %1853 = vmatprep.subr.bf16.mxu1 %v2015_v0 }
0x1c65   :  { %v1190_v45 = vpop.f32.mrb[28].mxu1 }
0x1c66   :  { %v1196_v48 = vadd.f32 %v1190_v45, %v893_v47  ;;  %v1827_v30 = vpop.f32.mrb[29].mxu1 }
0x1c67   :  { %v1193_v20 = vpop.f32.mrb[30].mxu1  ;;  %v906_v30 = vadd.f32 %v2350_v7, %v2303_v17 }
0x1c68   :  { %1975 = vtanh.f32 %v1196_v48  ;;  %v1828_v49 = vpop.f32.mrb[31].mxu1  ;;  %v1636_v52 = vmul.f32 -1.442695, %v1196_v48 }
0x1c6a   :  { %1977 = vpow2.f32 %v1636_v52 }
0x1c72   :  { %v1976_v51 = vpop.eup %1975 }
0x1c73   :  { %1206 = vrot.lane.b32.xlu1 %v1976_v51, %s2018_s19 }
0x1c74   :  { %v1978_v54 = vpop.eup %1977 }
0x1c75   :  { %v1200_v59 = vadd.f32 1.0, %v1978_v54 }
0x1c77   :  { %1979 = vrcp.f32 %v1200_v59 }
0x1c81   :  { %v1980_v4 = vpop.eup %1979 }
0x1c82   :  { %v1204_v10 = vmul.f32 %v1980_v4, %v1141_v40 }
0x1ce5   :  { %v1207_v50 = vpop.permute.xlu1 %1206 }
0x1ce6   :  { %v1209_v60 = vmul.f32 %v1980_v4, %v1207_v50 }
0x1ce8   :  { %1211 = vrot.lane.b32.xlu0 %v1209_v60, %s2019_s2 }
0x1d5a   :  { %v1212_v53 = vpop.permute.xlu0 %1211 }
0x1d5b   :  { %v1214_v41 = vadd.f32 %v1212_v53, %v1204_v10 }
0x1d5d   :  { %1981 = vtanh.f32 %v1214_v41 }
0x1d67   :  { %v1982_v61 = vpop.eup %1981 }
0x1d68   :  { %1217 = vrot.lane.b32.xlu1 %v1982_v61, %s2018_s19 }
0x1dda   :  { %v1218_v56 = vpop.permute.xlu1 %1217 }
0x1ddb   :  { %v1220_v1 = vmul.f32 %v1980_v4, %v1218_v56 }
0x1ddd   :  { %v1222_v9 = vpack.c.bf16 %v1220_v1, %v1220_v1 }
0x1ddf   :  { %1224 = vrot.lane.b32.xlu0 %v1222_v9, %s2019_s2 }
0x1e51   :  { %v1225_v12 = vpop.permute.xlu0 %1224 }
0x1e52   :  { %1834 = vmatmul.mubr.msk.bf16.vlgmr.msra.gmra.mrb[32].mxu0 %vm179_vm2, %v1225_v12 }
0x1e53   :  { %1846 = vmatpush3.bf16.msra.mxu0 %v2266_v62  ;;  %1849 = vmatprep.mubr.msk.bf16.mxu0 %vm2016_vm0, %v2015_v0 }
0x1e54   :  { %1847 = vmatprep.subr.bf16.mxu0 %v2015_v0 }
0x1e57   :  { %1848 = vmatpush3.bf16.msra.mxu0 %v2274_v63 }
0x1e58   :  { %1861 = vmatprep.subr.bf16.mxu0 %v2015_v0 }
0x1f25   :  { %v1263_v13 = vpop.f32.mrb[32].mxu0 }
0x1f26   :  { %v1269_v14 = vadd.f32 %v1263_v13, %v898_v6  ;;  %v1835_v15 = vpop.f32.mrb[33].mxu0 }
0x1f27   :  { %v1266_v8 = vpop.f32.mrb[34].mxu0 }
0x1f28   :  { %1983 = vtanh.f32 %v1269_v14  ;;  %v1836_v16 = vpop.f32.mrb[35].mxu0  ;;  %v1638_v18 = vmul.f32 -1.442695, %v1269_v14  ;;  %v909_v14 = vadd.f32 %v2354_v23, %v2303_v17 }
0x1f2a   :  { %1985 = vpow2.f32 %v1638_v18 }
0x1f32   :  { %v1984_v2 = vpop.eup %1983 }
0x1f33   :  { %1279 = vrot.lane.b32.xlu1 %v1984_v2, %s2018_s19 }
0x1f34   :  { %v1986_v19 = vpop.eup %1985 }
0x1f35   :  { %v1273_v5 = vadd.f32 1.0, %v1986_v19 }
0x1f37   :  { %1987 = vrcp.f32 %v1273_v5 }
0x1f41   :  { %v1988_v27 = vpop.eup %1987 }
0x1f42   :  { %v1277_v58 = vmul.f32 %v1988_v27, %v1214_v41 }
0x1fa5   :  { %v1280_v21 = vpop.permute.xlu1 %1279 }
0x1fa6   :  { %v1282_v22 = vmul.f32 %v1988_v27, %v1280_v21 }
0x1fa8   :  { %1284 = vrot.lane.b32.xlu0 %v1282_v22, %s2019_s2 }
0x201a   :  { %v1285_v57 = vpop.permute.xlu0 %1284 }
0x201b   :  { %v1287_v25 = vadd.f32 %v1285_v57, %v1277_v58 }
0x201d   :  { %1989 = vtanh.f32 %v1287_v25 }
0x2027   :  { %v1990_v26 = vpop.eup %1989 }
0x2028   :  { %1290 = vrot.lane.b32.xlu1 %v1990_v26, %s2018_s19 }
0x209a   :  { %v1291_v28 = vpop.permute.xlu1 %1290 }
0x209b   :  { %v1293_v29 = vmul.f32 %v1988_v27, %v1291_v28  ;;  %v1885_v28 = vld [vmem:[%s2443_s7] sm:$0xff]  }
0x209d   :  { %v1295_v31 = vpack.c.bf16 %v1293_v29, %v1293_v29  ;;  %v1886_v29 = vld [vmem:[%s2443_s7 + $0x8] sm:$0xff]  }
0x209f   :  { %1297 = vrot.lane.b32.xlu0 %v1295_v31, %s2019_s2 }
0x2111   :  { %v1298_v32 = vpop.permute.xlu0 %1297 }
0x2112   :  { %1842 = vmatmul.mubr.msk.bf16.vlgmr.msra.gmra.mrb[32].mxu1 %vm179_vm2, %v1298_v32 }
0x2113   :  { %1854 = vmatpush3.bf16.msra.mxu1 %v2266_v62  ;;  %1857 = vmatprep.mubr.msk.bf16.mxu1 %vm2016_vm0, %v2015_v0 }
0x2114   :  { %1855 = vmatprep.subr.bf16.mxu1 %v2015_v0 }
0x2117   :  { %1856 = vmatpush3.bf16.msra.mxu1 %v2274_v63 }
0x21e5   :  { %v1336_v34 = vpop.f32.mrb[32].mxu1 }
0x21e6   :  { %v1342_v35 = vadd.f32 %v1336_v34, %v901_v33  ;;  %v1843_v36 = vpop.f32.mrb[33].mxu1  ;;  %v1518_v34 = vld [vmem:[#allocation4] sm:$0xff] }
0x21e7   :  { %v1339_v11 = vpop.f32.mrb[34].mxu1 }
0x21e8   :  { %1991 = vtanh.f32 %v1342_v35  ;;  %v1844_v37 = vpop.f32.mrb[35].mxu1  ;;  %v1640_v62 = vmul.f32 -1.442695, %v1342_v35  ;;  %v1645_v11 = vld [vmem:[%s2444_s8] ss:$0 sm:$0xff] }
0x21ea   :  { %1993 = vpow2.f32 %v1640_v62 }
0x21f2   :  { %v1992_v38 = vpop.eup %1991 }
0x21f3   :  { %1352 = vrot.lane.b32.xlu1 %v1992_v38, %s2018_s19 }
0x21f4   :  { %v1994_v3 = vpop.eup %1993 }
0x21f5   :  { %v1346_v39 = vadd.f32 1.0, %v1994_v3 }
0x21f7   :  { %1995 = vrcp.f32 %v1346_v39 }
0x2201   :  { %v1996_v40 = vpop.eup %1995 }
0x2202   :  { %v1350_v24 = vmul.f32 %v1996_v40, %v1287_v25 }
0x2265   :  { %v1353_v42 = vpop.permute.xlu1 %1352 }
0x2266   :  { %v1355_v63 = vmul.f32 %v1996_v40, %v1353_v42 }
0x2268   :  { %1357 = vrot.lane.b32.xlu0 %v1355_v63, %s2019_s2 }
0x22da   :  { %v1358_v43 = vpop.permute.xlu0 %1357 }
0x22db   :  { %v1360_v55 = vadd.f32 %v1358_v43, %v1350_v24 }
0x22dd   :  { %1997 = vtanh.f32 %v1360_v55 }
0x22e7   :  { %v1998_v44 = vpop.eup %1997 }
0x22e8   :  { %1363 = vrot.lane.b32.xlu1 %v1998_v44, %s2018_s19 }
0x235a   :  { %v1364_v46 = vpop.permute.xlu1 %1363 }
0x235b   :  { %v1366_v47 = vmul.f32 %v1996_v40, %v1364_v46 }
0x235d   :  { %v1368_v45 = vpack.c.bf16 %v1366_v47, %v1366_v47 }
0x235f   :  { %1370 = vrot.lane.b32.xlu0 %v1368_v45, %s2019_s2 }
0x23d1   :  { %v1371_v48 = vpop.permute.xlu0 %1370 }
0x23d2   :  { %1850 = vmatmul.mubr.msk.bf16.vlgmr.msra.gmra.mrb[36].mxu0 %vm179_vm2, %v1371_v48 }
0x23d3   :  { %1865 = vmatprep.mubr.msk.bf16.mxu0 %vm2016_vm0, %v2015_v0  ;;  %1862 = vmatpush3.bf16.msra.mxu0 %v1885_v28 }
0x23d4   :  { %1863 = vmatprep.subr.bf16.mxu0 %v2015_v0 }
0x23d7   :  { %1864 = vmatpush3.bf16.msra.mxu0 %v1886_v29 }
0x24a5   :  { %v1409_v20 = vpop.f32.mrb[36].mxu0 }
0x24a6   :  { %v1415_v49 = vadd.f32 %v1409_v20, %v906_v30  ;;  %v1851_v51 = vpop.f32.mrb[37].mxu0 }
0x24a7   :  { %v1412_v52 = vpop.f32.mrb[38].mxu0 }
0x24a8   :  { %1999 = vtanh.f32 %v1415_v49  ;;  %v1852_v54 = vpop.f32.mrb[39].mxu0  ;;  %v1642_v4 = vmul.f32 -1.442695, %v1415_v49 }
0x24aa   :  { %2001 = vpow2.f32 %v1642_v4 }
0x24b2   :  { %v2000_v59 = vpop.eup %1999 }
0x24b3   :  { %1425 = vrot.lane.b32.xlu1 %v2000_v59, %s2018_s19 }
0x24b4   :  { %v2002_v50 = vpop.eup %2001 }
0x24b5   :  { %v1419_v60 = vadd.f32 1.0, %v2002_v50 }
0x24b7   :  { %2003 = vrcp.f32 %v1419_v60 }
0x24c1   :  { %v2004_v10 = vpop.eup %2003 }
0x24c2   :  { %v1423_v7 = vmul.f32 %v2004_v10, %v1360_v55 }
0x2525   :  { %v1426_v53 = vpop.permute.xlu1 %1425 }
0x2526   :  { %v1428_v41 = vmul.f32 %v2004_v10, %v1426_v53 }
0x2528   :  { %1430 = vrot.lane.b32.xlu0 %v1428_v41, %s2019_s2 }
0x259a   :  { %v1431_v61 = vpop.permute.xlu0 %1430 }
0x259b   :  { %v1433_v56 = vadd.f32 %v1431_v61, %v1423_v7 }
0x259d   :  { %2005 = vtanh.f32 %v1433_v56 }
0x25a7   :  { %v2006_v1 = vpop.eup %2005 }
0x25a8   :  { %1436 = vrot.lane.b32.xlu1 %v2006_v1, %s2018_s19 }
0x261a   :  { %v1437_v9 = vpop.permute.xlu1 %1436 }
0x261b   :  { %v1439_v12 = vmul.f32 %v2004_v10, %v1437_v9 }
0x261d   :  { %v1441_v6 = vpack.c.bf16 %v1439_v12, %v1439_v12 }
0x261f   :  { %1443 = vrot.lane.b32.xlu0 %v1441_v6, %s2019_s2 }
0x2691   :  { %v1444_v13 = vpop.permute.xlu0 %1443 }
0x2692   :  { %1858 = vmatmul.mubr.msk.bf16.vlgmr.msra.gmra.mrb[36].mxu1 %vm179_vm2, %v1444_v13 }
0x2765   :  { %v1482_v15 = vpop.f32.mrb[36].mxu1 }
0x2766   :  { %v1488_v8 = vadd.f32 %v1482_v15, %v909_v14  ;;  %v1859_v16 = vpop.f32.mrb[37].mxu1 }
0x2767   :  { %v1485_v2 = vpop.f32.mrb[38].mxu1 }
0x2768   :  { %2007 = vtanh.f32 %v1488_v8  ;;  %v1860_v18 = vpop.f32.mrb[39].mxu1  ;;  %v1644_v5 = vmul.f32 -1.442695, %v1488_v8 }
0x276a   :  { %2009 = vpow2.f32 %v1644_v5 }
0x2772   :  { %v2008_v19 = vpop.eup %2007 }
0x2773   :  { %1498 = vrot.lane.b32.xlu1 %v2008_v19, %s2018_s19 }
0x2774   :  { %v2010_v27 = vpop.eup %2009 }
0x2775   :  { %v1492_v21 = vadd.f32 1.0, %v2010_v27 }
0x2777   :  { %2011 = vrcp.f32 %v1492_v21 }
0x2781   :  { %v2012_v22 = vpop.eup %2011 }
0x2782   :  { %v1496_v17 = vmul.f32 %v2012_v22, %v1433_v56 }
0x27e5   :  { %v1499_v58 = vpop.permute.xlu1 %1498 }
0x27e6   :  { %v1501_v57 = vmul.f32 %v2012_v22, %v1499_v58 }
0x27e8   :  { %1503 = vrot.lane.b32.xlu0 %v1501_v57, %s2019_s2 }
0x285a   :  { %v1504_v23 = vpop.permute.xlu0 %1503 }
0x285b   :  { %v1506_v25 = vadd.f32 %v1504_v23, %v1496_v17 }
0x285d   :  { %2013 = vtanh.f32 %v1506_v25 }
0x2867   :  { %v2014_v26 = vpop.eup %2013 }
0x2868   :  { %1509 = vrot.lane.b32.xlu1 %v2014_v26, %s2018_s19 }
0x28da   :  { %v1510_v31 = vpop.permute.xlu1 %1509 }
0x28db   :  { %v1512_v32 = vmul.f32 %v2012_v22, %v1510_v31 }
0x28dd   :  { %1514 = vrot.lane.b32.xlu0 %v1512_v32, %s2019_s2 }
0x294f   :  { %v1515_v33 = vpop.permute.xlu0 %1514 }
0x2950   :  { %1517 = vst.msk [vmem:[#allocation4 + $0x8] sm:$0xff] %vm179_vm2, %v1515_v33 }
0x2957   :  { %v1519_v35 = vld [vmem:[#allocation4 + $0x8] sm:$0xff] }
0x2958   :  { %v1520_v36 = vpack.c.bf16 %v1519_v35, %v1518_v34 }
0x295a   :  { %1866 = vmatmul.mubr.msk.bf16.vlgmr.msra.gmra.mrb[40].mxu0 %vm179_vm2, %v1520_v36 }
0x2a2d   :  { %v1581_v37 = vpop.f32.mrb[40].mxu0 }
0x2a2e   :  { %v1582_v38 = vadd.f32 %v1645_v11, %v1581_v37  ;;  %v1867_v0 = vpop.f32.mrb[41].mxu0 }
0x2a2f   :  { %v1584_v62 = vpop.f32.mrb[42].mxu0 }
0x2a30   :  { %1588 = vst [vmem:[%s2445_s9] sm:$0xff] %v1582_v38  ;;  %v1585_v3 = vadd.f32 %v1645_v11, %v1584_v62  ;;  %v1868_v39 = vpop.f32.mrb[43].mxu0 }
0x2a32   :  { %1589 = vst [vmem:[%s2445_s9 + $0x8] sm:$0xff] %v1585_v3 }

</bundles_post_ra>
